<compile_context>
chip_gen: v7x
topology: tpu7x:2x2x1
jax: 0.10.0
libtpu: 0.0.40
codegen_flags: <defaults>
</compile_context>

<pallas_src>
import jax
import jax.numpy as jnp
from jax import lax
from jax.experimental import pallas as pl
from jax.experimental.pallas import tpu as pltpu


def _round_up(n, m):
    return ((n + m - 1) // m) * m


def seq2seq_forward(x, prev_y, target_y, params, tf_mask):
    """x: (1,S,F); prev_y: (1,1,1); target_y: (1,L,1); tf_mask: (L,) in {0,1}."""
    S, F = x.shape[1], x.shape[2]
    L = target_y.shape[1]
    H = params["w_hh_e"].shape[0]
    G = 4 * H
    assert G == 128, "lane-packing / y-broadcast tricks assume 4*hidden == 128"
    assert L <= 128
    f32 = jnp.float32

    # ---------------- bf16 weight slab: [w_ih_e ; w_hh_e ; W_dec] -------------
    r_hhe = _round_up(F, 16)                 # 16-row aligned (bf16 sublane pack)
    r_dec = r_hhe + _round_up(H, 16)
    n_wrows = r_dec + _round_up(H, 16)
    w_dec = jnp.concatenate(
        [params["w_hh_d"], jnp.broadcast_to(params["w_out"].T, (H, 128))],
        axis=1)                                                  # (H, G+128)
    w_slab = jnp.zeros((n_wrows, G + 128), f32)
    w_slab = w_slab.at[0:F, 0:G].set(params["w_ih_e"])
    w_slab = w_slab.at[r_hhe:r_hhe + H, 0:G].set(params["w_hh_e"])
    w_slab = w_slab.at[r_dec:r_dec + H, :].set(w_dec)
    w_slab = w_slab.astype(jnp.bfloat16)

    # ------------- pre-fold teacher forcing into per-step gate rows -----------
    tf_row = tf_mask.reshape(L).astype(f32)
    tgt = target_y.reshape(L).astype(f32)
    a_vec = tf_row * tgt                       # teacher-forced contribution
    b_vec = 1.0 - tf_row                       # weight of model's own output
    prev0 = prev_y.reshape(1).astype(f32)
    # decoder input at step t:  u_t = u_bias[t] + u_scale[t] * d_{t-1}
    u_bias = jnp.concatenate([prev0, a_vec[:-1]])
    u_scale = jnp.concatenate([jnp.zeros((1,), f32), b_vec[:-1]])
    bias_g = u_bias[:, None] * params["w_ih_d"] + params["b_d"]   # (L, G)
    scale_g = u_scale[:, None] * params["w_ih_d"]                 # (L, G)

    R_BE, R_BOUT, R_A, R_B = 2 * L, 2 * L + 1, 2 * L + 2, 2 * L + 3
    n_vrows = _round_up(2 * L + 4, 8)
    vec_slab = jnp.zeros((n_vrows, 128), f32)
    vec_slab = vec_slab.at[0:L, :].set(bias_g)
    vec_slab = vec_slab.at[L:2 * L, :].set(scale_g)
    vec_slab = vec_slab.at[R_BE, :].set(params["b_e"].reshape(G))
    vec_slab = vec_slab.at[R_BOUT, :].set(
        jnp.broadcast_to(params["b_out"].reshape(1), (128,)))
    vec_slab = vec_slab.at[R_A, :L].set(a_vec)
    vec_slab = vec_slab.at[R_B, :L].set(b_vec)

    x2d = x.reshape(S, F).astype(f32)

    def kernel(x_ref, w_ref, vec_ref, out_ref):
        vec = vec_ref[...]                                   # (n_vrows, 128) f32
        b_e = vec[R_BE:R_BE + 1, :]
        b_out_b = vec[R_BOUT:R_BOUT + 1, :]
        a_row = vec[R_A:R_A + 1, :]
        b_row = vec[R_B:R_B + 1, :]

        def lstm_cell(gates, c):
            # 2 whole-vreg EUP calls; gate math stays f32 (v5e-safe); h is
            # emitted already cast to bf16 for the next MXU push.
            sig = jax.nn.sigmoid(gates)                      # (1, 4H)
            th = jnp.tanh(gates)
            i = sig[:, 0:H]                                  # offset-0: free
            f = sig[:, H:2 * H]
            g = th[:, 2 * H:3 * H]
            o = sig[:, 3 * H:4 * H]
            c_new = f * c + i * g
            h_new = o * jnp.tanh(c_new)
            return h_new.astype(jnp.bfloat16), c_new

        # -------- Encoder: hoisted input projection + serial recurrence -------
        x_bf = x_ref[...].astype(jnp.bfloat16)               # one-time, off chain
        gates_x = jnp.dot(x_bf, w_ref[0:F, 0:G],
                          preferred_element_type=f32) + b_e  # (S, 4H) f32
        w_hh_e = w_ref[r_hhe:r_hhe + H, 0:G]                 # (H, 4H) bf16
        h_bf = jnp.zeros((1, H), jnp.bfloat16)
        c = jnp.zeros((1, H), f32)
        for t in range(S):                                   # static unroll
            gates = gates_x[t:t + 1, :] + jnp.dot(
                h_bf, w_hh_e, preferred_element_type=f32)
            h_bf, c = lstm_cell(gates, c)

        # -------- Decoder: fused [gates | y-broadcast] matmul per step --------
        w_dec_k = w_ref[r_dec:r_dec + H, :]                  # (H, 4H+128) bf16
        lane = lax.broadcasted_iota(jnp.int32, (1, 128), 1)
        d_prev = jnp.zeros((1, 128), f32)                    # unused at t=0 (scale_g[0]=0)
        dec_row = jnp.zeros((1, 128), f32)
        for t in range(L):                                   # static unroll
            fused = jnp.dot(h_bf, w_dec_k, preferred_element_type=f32)  # (1, 4H+128)
            if t >= 1:
                # y of h_{t-1}, already lane-broadcast in lanes 4H..4H+127
                d_prev = jax.nn.sigmoid(fused[:, G:] + b_out_b) * 2.0
                dec_row = jnp.where(lane == (t - 1), d_prev, dec_row)   # off chain
            gates = fused[:, 0:G] + d_prev * vec[L + t:L + t + 1, :] + vec[t:t + 1, :]
            h_bf, c = lstm_cell(gates, c)
        # last decoder output (from h_{L-1})
        y_last = jnp.dot(h_bf, w_dec_k[:, G:], preferred_element_type=f32)
        d_last = jax.nn.sigmoid(y_last + b_out_b) * 2.0
        dec_row = jnp.where(lane == (L - 1), d_last, dec_row)

        # TF mixing once, lane-dense full-vreg store (wrapper slices to L)
        out_ref[...] = a_row + b_row * dec_row

    vmem = pl.BlockSpec(memory_space=pltpu.MemorySpace.VMEM)
    out128 = pl.pallas_call(
        kernel,
        out_shape=jax.ShapeDtypeStruct((1, 128), f32),
        in_specs=[vmem, vmem, vmem],
        out_specs=vmem,
    )(x2d, w_slab, vec_slab)
    return out128[0, :L].reshape(L, 1)   # == torch.stack(targets_ta)


def reference_forward(x, prev_y, target_y, params, tf_mask):
    """Pure-jnp mirror of the module (same bf16 casts on MXU operands)."""
    H = params["w_hh_e"].shape[0]
    S, L = x.shape[1], target_y.shape[1]
    bf = lambda a: a.astype(jnp.bfloat16)
    dotf = lambda a, b: jnp.dot(bf(a), bf(b), preferred_element_type=jnp.float32)

    def cell(gates, c):
        i = jax.nn.sigmoid(gates[:, :H])
        f = jax.nn.sigmoid(gates[:, H:2 * H])
        g = jnp.tanh(gates[:, 2 * H:3 * H])
        o = jax.nn.sigmoid(gates[:, 3 * H:])
        c = f * c + i * g
        return o * jnp.tanh(c), c

    h = jnp.zeros((1, H), jnp.float32)
    c = jnp.zeros((1, H), jnp.float32)
    for t in range(S):
        gates = (dotf(x[0, t:t + 1, :], params["w_ih_e"]) + params["b_e"]
                 + dotf(h, params["w_hh_e"]))
        h, c = cell(gates, c)
    prev = prev_y.reshape(1, 1)
    outs = []
    for t in range(L):
        gates = prev * params["w_ih_d"] + params["b_d"] + dotf(h, params["w_hh_d"])
        h, c = cell(gates, c)
        y = dotf(h, params["w_out"].T) + params["b_out"]
        d = jax.nn.sigmoid(y) * 2.0
        prev = tf_mask[t] * target_y[0, t, 0] + (1.0 - tf_mask[t]) * d
        outs.append(prev.reshape(1))
    return jnp.stack(outs)


def init_params(key, n_features, hidden_dim):
    """Deterministic synthetic params; LSTM weights stored transposed (in, 4H)."""
    H = hidden_dim
    ks = jax.random.split(key, 10)
    scale = 1.0 / jnp.sqrt(jnp.float32(H))

    def u(k, shape):
        return jax.random.uniform(k, shape, jnp.float32, -scale, scale)

    return {
        "w_ih_e": u(ks[0], (n_features, 4 * H)),
        "w_hh_e": u(ks[1], (H, 4 * H)),
        "b_e":    u(ks[2], (1, 4 * H)) + u(ks[3], (1, 4 * H)),   # b_ih + b_hh
        "w_ih_d": u(ks[4], (1, 4 * H)),
        "w_hh_d": u(ks[5], (H, 4 * H)),
        "b_d":    u(ks[6], (1, 4 * H)) + u(ks[7], (1, 4 * H)),
        "w_out":  u(ks[8], (1, H)),
        "b_out":  u(ks[9], (1, 1)),
    }


if __name__ == "__main__":
    n_features = 8
    hidden_dim = 32            # encoder == decoder hidden (required by the module)
    seq_len = 8
    output_length = 8
    teacher_force_ratio = 0.5

    key = jax.random.PRNGKey(0)
    k_x, k_py, k_ty, k_p, k_tf = jax.random.split(key, 5)

    x = jax.random.normal(k_x, (1, seq_len, n_features), jnp.float32)
    prev_y = jax.random.normal(k_py, (1, 1, 1), jnp.float32)
    target_y = jax.random.normal(k_ty, (1, output_length, 1), jnp.float32)
    params = init_params(k_p, n_features, hidden_dim)

    # TODO(synk): PyTorch draws random.random() per decode step with Python's
    # RNG; here the Bernoulli teacher-forcing mask is drawn per call with
    # jax.random, so the stochastic stream (not the semantics) differs.
    tf_mask = jax.random.bernoulli(
        k_tf, teacher_force_ratio, (output_length,)).astype(jnp.float32)

    targets = seq2seq_forward(x, prev_y, target_y, params, tf_mask)
    targets = jax.block_until_ready(targets)
    ref = reference_forward(x, prev_y, target_y, params, tf_mask)

    assert targets.shape == (output_length, 1)
    assert bool(jnp.all(jnp.isfinite(targets)))
    err = float(jnp.max(jnp.abs(targets - ref)))
    assert err < 1e-2, f"kernel/reference mismatch: max abs err = {err}"
    print("KERNEL_OK")
</pallas_src>

<mosaic_0001>
module attributes {stable_mosaic.version = 11 : i64} {
  func.func @kernel(%arg0: memref<8x8xf32, #tpu.memory_space<vmem>>, %arg1: memref<80x256xbf16, #tpu.memory_space<vmem>>, %arg2: memref<24x128xf32, #tpu.memory_space<vmem>>, %arg3: memref<1x128xf32, #tpu.memory_space<vmem>>) attributes {dimension_semantics = [], scalar_prefetch = 0 : i64, scratch_operands = 0 : i64, tpu.core_type = #tpu.core_type<tc>} {
    %c0 = arith.constant 0 : index
    %c0_0 = arith.constant 0 : index
    %0 = vector.load %arg2[%c0, %c0_0] : memref<24x128xf32, #tpu.memory_space<vmem>>, vector<24x128xf32>
    %1 = vector.extract_strided_slice %0 {offsets = [16, 0], sizes = [1, 128], strides = [1, 1]} : vector<24x128xf32> to vector<1x128xf32>
    %2 = vector.extract_strided_slice %0 {offsets = [17, 0], sizes = [1, 128], strides = [1, 1]} : vector<24x128xf32> to vector<1x128xf32>
    %3 = vector.extract_strided_slice %0 {offsets = [18, 0], sizes = [1, 128], strides = [1, 1]} : vector<24x128xf32> to vector<1x128xf32>
    %4 = vector.extract_strided_slice %0 {offsets = [19, 0], sizes = [1, 128], strides = [1, 1]} : vector<24x128xf32> to vector<1x128xf32>
    %c0_1 = arith.constant 0 : index
    %c0_2 = arith.constant 0 : index
    %5 = vector.load %arg0[%c0_1, %c0_2] : memref<8x8xf32, #tpu.memory_space<vmem>>, vector<8x8xf32>
    %6 = arith.truncf %5 : vector<8x8xf32> to vector<8x8xbf16>
    %c0_3 = arith.constant 0 : index
    %c0_4 = arith.constant 0 : index
    %7 = vector.load %arg1[%c0_3, %c0_4] : memref<80x256xbf16, #tpu.memory_space<vmem>>, vector<8x128xbf16>
    %cst = arith.constant dense<0.000000e+00> : vector<8x128xf32>
    %8 = tpu.matmul %6, %7, %cst {dimension_numbers = #tpu.dot_dimension_numbers<[1], [0], [0], [1], [0, 0, 1, 1], [], []>} : vector<8x8xbf16>, vector<8x128xbf16>, vector<8x128xf32> -> vector<8x128xf32>
    %9 = vector.broadcast %1 : vector<1x128xf32> to vector<8x128xf32>
    %10 = arith.addf %8, %9 : vector<8x128xf32>
    %c16 = arith.constant 16 : index
    %c0_5 = arith.constant 0 : index
    %11 = vector.load %arg1[%c16, %c0_5] : memref<80x256xbf16, #tpu.memory_space<vmem>>, vector<32x128xbf16>
    %cst_6 = arith.constant 0.000000e+00 : bf16
    %12 = vector.broadcast %cst_6 : bf16 to vector<1x32xbf16>
    %cst_7 = arith.constant 0.000000e+00 : f32
    %13 = vector.broadcast %cst_7 : f32 to vector<1x32xf32>
    %14 = vector.extract_strided_slice %10 {offsets = [0, 0], sizes = [1, 128], strides = [1, 1]} : vector<8x128xf32> to vector<1x128xf32>
    %cst_8 = arith.constant dense<0.000000e+00> : vector<1x128xf32>
    %15 = tpu.matmul %12, %11, %cst_8 {dimension_numbers = #tpu.dot_dimension_numbers<[1], [0], [0], [1], [0, 0, 1, 1], [], []>} : vector<1x32xbf16>, vector<32x128xbf16>, vector<1x128xf32> -> vector<1x128xf32>
    %16 = arith.addf %14, %15 : vector<1x128xf32>
    %17 = arith.negf %16 : vector<1x128xf32>
    %18 = math.exp %17 : vector<1x128xf32>
    %cst_9 = arith.constant 1.000000e+00 : f32
    %19 = vector.broadcast %cst_9 : f32 to vector<1x128xf32>
    %20 = arith.addf %19, %18 : vector<1x128xf32>
    %21 = arith.divf %19, %20 : vector<1x128xf32>
    %22 = math.tanh %16 : vector<1x128xf32>
    %23 = vector.extract_strided_slice %21 {offsets = [0, 0], sizes = [1, 32], strides = [1, 1]} : vector<1x128xf32> to vector<1x32xf32>
    %24 = vector.extract_strided_slice %21 {offsets = [0, 32], sizes = [1, 32], strides = [1, 1]} : vector<1x128xf32> to vector<1x32xf32>
    %25 = vector.extract_strided_slice %22 {offsets = [0, 64], sizes = [1, 32], strides = [1, 1]} : vector<1x128xf32> to vector<1x32xf32>
    %26 = vector.extract_strided_slice %21 {offsets = [0, 96], sizes = [1, 32], strides = [1, 1]} : vector<1x128xf32> to vector<1x32xf32>
    %27 = arith.mulf %24, %13 : vector<1x32xf32>
    %28 = arith.mulf %23, %25 : vector<1x32xf32>
    %29 = arith.addf %27, %28 : vector<1x32xf32>
    %30 = math.tanh %29 : vector<1x32xf32>
    %31 = arith.mulf %26, %30 : vector<1x32xf32>
    %32 = arith.truncf %31 : vector<1x32xf32> to vector<1x32xbf16>
    %33 = vector.extract_strided_slice %10 {offsets = [1, 0], sizes = [1, 128], strides = [1, 1]} : vector<8x128xf32> to vector<1x128xf32>
    %cst_10 = arith.constant dense<0.000000e+00> : vector<1x128xf32>
    %34 = tpu.matmul %32, %11, %cst_10 {dimension_numbers = #tpu.dot_dimension_numbers<[1], [0], [0], [1], [0, 0, 1, 1], [], []>} : vector<1x32xbf16>, vector<32x128xbf16>, vector<1x128xf32> -> vector<1x128xf32>
    %35 = arith.addf %33, %34 : vector<1x128xf32>
    %36 = arith.negf %35 : vector<1x128xf32>
    %37 = math.exp %36 : vector<1x128xf32>
    %cst_11 = arith.constant 1.000000e+00 : f32
    %38 = vector.broadcast %cst_11 : f32 to vector<1x128xf32>
    %39 = arith.addf %38, %37 : vector<1x128xf32>
    %40 = arith.divf %38, %39 : vector<1x128xf32>
    %41 = math.tanh %35 : vector<1x128xf32>
    %42 = vector.extract_strided_slice %40 {offsets = [0, 0], sizes = [1, 32], strides = [1, 1]} : vector<1x128xf32> to vector<1x32xf32>
    %43 = vector.extract_strided_slice %40 {offsets = [0, 32], sizes = [1, 32], strides = [1, 1]} : vector<1x128xf32> to vector<1x32xf32>
    %44 = vector.extract_strided_slice %41 {offsets = [0, 64], sizes = [1, 32], strides = [1, 1]} : vector<1x128xf32> to vector<1x32xf32>
    %45 = vector.extract_strided_slice %40 {offsets = [0, 96], sizes = [1, 32], strides = [1, 1]} : vector<1x128xf32> to vector<1x32xf32>
    %46 = arith.mulf %43, %29 : vector<1x32xf32>
    %47 = arith.mulf %42, %44 : vector<1x32xf32>
    %48 = arith.addf %46, %47 : vector<1x32xf32>
    %49 = math.tanh %48 : vector<1x32xf32>
    %50 = arith.mulf %45, %49 : vector<1x32xf32>
    %51 = arith.truncf %50 : vector<1x32xf32> to vector<1x32xbf16>
    %52 = vector.extract_strided_slice %10 {offsets = [2, 0], sizes = [1, 128], strides = [1, 1]} : vector<8x128xf32> to vector<1x128xf32>
    %cst_12 = arith.constant dense<0.000000e+00> : vector<1x128xf32>
    %53 = tpu.matmul %51, %11, %cst_12 {dimension_numbers = #tpu.dot_dimension_numbers<[1], [0], [0], [1], [0, 0, 1, 1], [], []>} : vector<1x32xbf16>, vector<32x128xbf16>, vector<1x128xf32> -> vector<1x128xf32>
    %54 = arith.addf %52, %53 : vector<1x128xf32>
    %55 = arith.negf %54 : vector<1x128xf32>
    %56 = math.exp %55 : vector<1x128xf32>
    %cst_13 = arith.constant 1.000000e+00 : f32
    %57 = vector.broadcast %cst_13 : f32 to vector<1x128xf32>
    %58 = arith.addf %57, %56 : vector<1x128xf32>
    %59 = arith.divf %57, %58 : vector<1x128xf32>
    %60 = math.tanh %54 : vector<1x128xf32>
    %61 = vector.extract_strided_slice %59 {offsets = [0, 0], sizes = [1, 32], strides = [1, 1]} : vector<1x128xf32> to vector<1x32xf32>
    %62 = vector.extract_strided_slice %59 {offsets = [0, 32], sizes = [1, 32], strides = [1, 1]} : vector<1x128xf32> to vector<1x32xf32>
    %63 = vector.extract_strided_slice %60 {offsets = [0, 64], sizes = [1, 32], strides = [1, 1]} : vector<1x128xf32> to vector<1x32xf32>
    %64 = vector.extract_strided_slice %59 {offsets = [0, 96], sizes = [1, 32], strides = [1, 1]} : vector<1x128xf32> to vector<1x32xf32>
    %65 = arith.mulf %62, %48 : vector<1x32xf32>
    %66 = arith.mulf %61, %63 : vector<1x32xf32>
    %67 = arith.addf %65, %66 : vector<1x32xf32>
    %68 = math.tanh %67 : vector<1x32xf32>
    %69 = arith.mulf %64, %68 : vector<1x32xf32>
    %70 = arith.truncf %69 : vector<1x32xf32> to vector<1x32xbf16>
    %71 = vector.extract_strided_slice %10 {offsets = [3, 0], sizes = [1, 128], strides = [1, 1]} : vector<8x128xf32> to vector<1x128xf32>
    %cst_14 = arith.constant dense<0.000000e+00> : vector<1x128xf32>
    %72 = tpu.matmul %70, %11, %cst_14 {dimension_numbers = #tpu.dot_dimension_numbers<[1], [0], [0], [1], [0, 0, 1, 1], [], []>} : vector<1x32xbf16>, vector<32x128xbf16>, vector<1x128xf32> -> vector<1x128xf32>
    %73 = arith.addf %71, %72 : vector<1x128xf32>
    %74 = arith.negf %73 : vector<1x128xf32>
    %75 = math.exp %74 : vector<1x128xf32>
    %cst_15 = arith.constant 1.000000e+00 : f32
    %76 = vector.broadcast %cst_15 : f32 to vector<1x128xf32>
    %77 = arith.addf %76, %75 : vector<1x128xf32>
    %78 = arith.divf %76, %77 : vector<1x128xf32>
    %79 = math.tanh %73 : vector<1x128xf32>
    %80 = vector.extract_strided_slice %78 {offsets = [0, 0], sizes = [1, 32], strides = [1, 1]} : vector<1x128xf32> to vector<1x32xf32>
    %81 = vector.extract_strided_slice %78 {offsets = [0, 32], sizes = [1, 32], strides = [1, 1]} : vector<1x128xf32> to vector<1x32xf32>
    %82 = vector.extract_strided_slice %79 {offsets = [0, 64], sizes = [1, 32], strides = [1, 1]} : vector<1x128xf32> to vector<1x32xf32>
    %83 = vector.extract_strided_slice %78 {offsets = [0, 96], sizes = [1, 32], strides = [1, 1]} : vector<1x128xf32> to vector<1x32xf32>
    %84 = arith.mulf %81, %67 : vector<1x32xf32>
    %85 = arith.mulf %80, %82 : vector<1x32xf32>
    %86 = arith.addf %84, %85 : vector<1x32xf32>
    %87 = math.tanh %86 : vector<1x32xf32>
    %88 = arith.mulf %83, %87 : vector<1x32xf32>
    %89 = arith.truncf %88 : vector<1x32xf32> to vector<1x32xbf16>
    %90 = vector.extract_strided_slice %10 {offsets = [4, 0], sizes = [1, 128], strides = [1, 1]} : vector<8x128xf32> to vector<1x128xf32>
    %cst_16 = arith.constant dense<0.000000e+00> : vector<1x128xf32>
    %91 = tpu.matmul %89, %11, %cst_16 {dimension_numbers = #tpu.dot_dimension_numbers<[1], [0], [0], [1], [0, 0, 1, 1], [], []>} : vector<1x32xbf16>, vector<32x128xbf16>, vector<1x128xf32> -> vector<1x128xf32>
    %92 = arith.addf %90, %91 : vector<1x128xf32>
    %93 = arith.negf %92 : vector<1x128xf32>
    %94 = math.exp %93 : vector<1x128xf32>
    %cst_17 = arith.constant 1.000000e+00 : f32
    %95 = vector.broadcast %cst_17 : f32 to vector<1x128xf32>
    %96 = arith.addf %95, %94 : vector<1x128xf32>
    %97 = arith.divf %95, %96 : vector<1x128xf32>
    %98 = math.tanh %92 : vector<1x128xf32>
    %99 = vector.extract_strided_slice %97 {offsets = [0, 0], sizes = [1, 32], strides = [1, 1]} : vector<1x128xf32> to vector<1x32xf32>
    %100 = vector.extract_strided_slice %97 {offsets = [0, 32], sizes = [1, 32], strides = [1, 1]} : vector<1x128xf32> to vector<1x32xf32>
    %101 = vector.extract_strided_slice %98 {offsets = [0, 64], sizes = [1, 32], strides = [1, 1]} : vector<1x128xf32> to vector<1x32xf32>
    %102 = vector.extract_strided_slice %97 {offsets = [0, 96], sizes = [1, 32], strides = [1, 1]} : vector<1x128xf32> to vector<1x32xf32>
    %103 = arith.mulf %100, %86 : vector<1x32xf32>
    %104 = arith.mulf %99, %101 : vector<1x32xf32>
    %105 = arith.addf %103, %104 : vector<1x32xf32>
    %106 = math.tanh %105 : vector<1x32xf32>
    %107 = arith.mulf %102, %106 : vector<1x32xf32>
    %108 = arith.truncf %107 : vector<1x32xf32> to vector<1x32xbf16>
    %109 = vector.extract_strided_slice %10 {offsets = [5, 0], sizes = [1, 128], strides = [1, 1]} : vector<8x128xf32> to vector<1x128xf32>
    %cst_18 = arith.constant dense<0.000000e+00> : vector<1x128xf32>
    %110 = tpu.matmul %108, %11, %cst_18 {dimension_numbers = #tpu.dot_dimension_numbers<[1], [0], [0], [1], [0, 0, 1, 1], [], []>} : vector<1x32xbf16>, vector<32x128xbf16>, vector<1x128xf32> -> vector<1x128xf32>
    %111 = arith.addf %109, %110 : vector<1x128xf32>
    %112 = arith.negf %111 : vector<1x128xf32>
    %113 = math.exp %112 : vector<1x128xf32>
    %cst_19 = arith.constant 1.000000e+00 : f32
    %114 = vector.broadcast %cst_19 : f32 to vector<1x128xf32>
    %115 = arith.addf %114, %113 : vector<1x128xf32>
    %116 = arith.divf %114, %115 : vector<1x128xf32>
    %117 = math.tanh %111 : vector<1x128xf32>
    %118 = vector.extract_strided_slice %116 {offsets = [0, 0], sizes = [1, 32], strides = [1, 1]} : vector<1x128xf32> to vector<1x32xf32>
    %119 = vector.extract_strided_slice %116 {offsets = [0, 32], sizes = [1, 32], strides = [1, 1]} : vector<1x128xf32> to vector<1x32xf32>
    %120 = vector.extract_strided_slice %117 {offsets = [0, 64], sizes = [1, 32], strides = [1, 1]} : vector<1x128xf32> to vector<1x32xf32>
    %121 = vector.extract_strided_slice %116 {offsets = [0, 96], sizes = [1, 32], strides = [1, 1]} : vector<1x128xf32> to vector<1x32xf32>
    %122 = arith.mulf %119, %105 : vector<1x32xf32>
    %123 = arith.mulf %118, %120 : vector<1x32xf32>
    %124 = arith.addf %122, %123 : vector<1x32xf32>
    %125 = math.tanh %124 : vector<1x32xf32>
    %126 = arith.mulf %121, %125 : vector<1x32xf32>
    %127 = arith.truncf %126 : vector<1x32xf32> to vector<1x32xbf16>
    %128 = vector.extract_strided_slice %10 {offsets = [6, 0], sizes = [1, 128], strides = [1, 1]} : vector<8x128xf32> to vector<1x128xf32>
    %cst_20 = arith.constant dense<0.000000e+00> : vector<1x128xf32>
    %129 = tpu.matmul %127, %11, %cst_20 {dimension_numbers = #tpu.dot_dimension_numbers<[1], [0], [0], [1], [0, 0, 1, 1], [], []>} : vector<1x32xbf16>, vector<32x128xbf16>, vector<1x128xf32> -> vector<1x128xf32>
    %130 = arith.addf %128, %129 : vector<1x128xf32>
    %131 = arith.negf %130 : vector<1x128xf32>
    %132 = math.exp %131 : vector<1x128xf32>
    %cst_21 = arith.constant 1.000000e+00 : f32
    %133 = vector.broadcast %cst_21 : f32 to vector<1x128xf32>
    %134 = arith.addf %133, %132 : vector<1x128xf32>
    %135 = arith.divf %133, %134 : vector<1x128xf32>
    %136 = math.tanh %130 : vector<1x128xf32>
    %137 = vector.extract_strided_slice %135 {offsets = [0, 0], sizes = [1, 32], strides = [1, 1]} : vector<1x128xf32> to vector<1x32xf32>
    %138 = vector.extract_strided_slice %135 {offsets = [0, 32], sizes = [1, 32], strides = [1, 1]} : vector<1x128xf32> to vector<1x32xf32>
    %139 = vector.extract_strided_slice %136 {offsets = [0, 64], sizes = [1, 32], strides = [1, 1]} : vector<1x128xf32> to vector<1x32xf32>
    %140 = vector.extract_strided_slice %135 {offsets = [0, 96], sizes = [1, 32], strides = [1, 1]} : vector<1x128xf32> to vector<1x32xf32>
    %141 = arith.mulf %138, %124 : vector<1x32xf32>
    %142 = arith.mulf %137, %139 : vector<1x32xf32>
    %143 = arith.addf %141, %142 : vector<1x32xf32>
    %144 = math.tanh %143 : vector<1x32xf32>
    %145 = arith.mulf %140, %144 : vector<1x32xf32>
    %146 = arith.truncf %145 : vector<1x32xf32> to vector<1x32xbf16>
    %147 = vector.extract_strided_slice %10 {offsets = [7, 0], sizes = [1, 128], strides = [1, 1]} : vector<8x128xf32> to vector<1x128xf32>
    %cst_22 = arith.constant dense<0.000000e+00> : vector<1x128xf32>
    %148 = tpu.matmul %146, %11, %cst_22 {dimension_numbers = #tpu.dot_dimension_numbers<[1], [0], [0], [1], [0, 0, 1, 1], [], []>} : vector<1x32xbf16>, vector<32x128xbf16>, vector<1x128xf32> -> vector<1x128xf32>
    %149 = arith.addf %147, %148 : vector<1x128xf32>
    %150 = arith.negf %149 : vector<1x128xf32>
    %151 = math.exp %150 : vector<1x128xf32>
    %cst_23 = arith.constant 1.000000e+00 : f32
    %152 = vector.broadcast %cst_23 : f32 to vector<1x128xf32>
    %153 = arith.addf %152, %151 : vector<1x128xf32>
    %154 = arith.divf %152, %153 : vector<1x128xf32>
    %155 = math.tanh %149 : vector<1x128xf32>
    %156 = vector.extract_strided_slice %154 {offsets = [0, 0], sizes = [1, 32], strides = [1, 1]} : vector<1x128xf32> to vector<1x32xf32>
    %157 = vector.extract_strided_slice %154 {offsets = [0, 32], sizes = [1, 32], strides = [1, 1]} : vector<1x128xf32> to vector<1x32xf32>
    %158 = vector.extract_strided_slice %155 {offsets = [0, 64], sizes = [1, 32], strides = [1, 1]} : vector<1x128xf32> to vector<1x32xf32>
    %159 = vector.extract_strided_slice %154 {offsets = [0, 96], sizes = [1, 32], strides = [1, 1]} : vector<1x128xf32> to vector<1x32xf32>
    %160 = arith.mulf %157, %143 : vector<1x32xf32>
    %161 = arith.mulf %156, %158 : vector<1x32xf32>
    %162 = arith.addf %160, %161 : vector<1x32xf32>
    %163 = math.tanh %162 : vector<1x32xf32>
    %164 = arith.mulf %159, %163 : vector<1x32xf32>
    %165 = arith.truncf %164 : vector<1x32xf32> to vector<1x32xbf16>
    %c48 = arith.constant 48 : index
    %c0_24 = arith.constant 0 : index
    %166 = vector.load %arg1[%c48, %c0_24] : memref<80x256xbf16, #tpu.memory_space<vmem>>, vector<32x256xbf16>
    %167 = tpu.iota {dimensions = array<i32: 1>} : vector<1x128xi32>
    %cst_25 = arith.constant 0.000000e+00 : f32
    %168 = vector.broadcast %cst_25 : f32 to vector<1x128xf32>
    %cst_26 = arith.constant 0.000000e+00 : f32
    %169 = vector.broadcast %cst_26 : f32 to vector<1x128xf32>
    %cst_27 = arith.constant dense<0.000000e+00> : vector<1x256xf32>
    %170 = tpu.matmul %165, %166, %cst_27 {dimension_numbers = #tpu.dot_dimension_numbers<[1], [0], [0], [1], [0, 0, 1, 1], [], []>} : vector<1x32xbf16>, vector<32x256xbf16>, vector<1x256xf32> -> vector<1x256xf32>
    %171 = vector.extract_strided_slice %170 {offsets = [0, 0], sizes = [1, 128], strides = [1, 1]} : vector<1x256xf32> to vector<1x128xf32>
    %172 = vector.extract_strided_slice %0 {offsets = [8, 0], sizes = [1, 128], strides = [1, 1]} : vector<24x128xf32> to vector<1x128xf32>
    %173 = arith.mulf %168, %172 : vector<1x128xf32>
    %174 = arith.addf %171, %173 : vector<1x128xf32>
    %175 = vector.extract_strided_slice %0 {offsets = [0, 0], sizes = [1, 128], strides = [1, 1]} : vector<24x128xf32> to vector<1x128xf32>
    %176 = arith.addf %174, %175 : vector<1x128xf32>
    %177 = arith.negf %176 : vector<1x128xf32>
    %178 = math.exp %177 : vector<1x128xf32>
    %cst_28 = arith.constant 1.000000e+00 : f32
    %179 = vector.broadcast %cst_28 : f32 to vector<1x128xf32>
    %180 = arith.addf %179, %178 : vector<1x128xf32>
    %181 = arith.divf %179, %180 : vector<1x128xf32>
    %182 = math.tanh %176 : vector<1x128xf32>
    %183 = vector.extract_strided_slice %181 {offsets = [0, 0], sizes = [1, 32], strides = [1, 1]} : vector<1x128xf32> to vector<1x32xf32>
    %184 = vector.extract_strided_slice %181 {offsets = [0, 32], sizes = [1, 32], strides = [1, 1]} : vector<1x128xf32> to vector<1x32xf32>
    %185 = vector.extract_strided_slice %182 {offsets = [0, 64], sizes = [1, 32], strides = [1, 1]} : vector<1x128xf32> to vector<1x32xf32>
    %186 = vector.extract_strided_slice %181 {offsets = [0, 96], sizes = [1, 32], strides = [1, 1]} : vector<1x128xf32> to vector<1x32xf32>
    %187 = arith.mulf %184, %162 : vector<1x32xf32>
    %188 = arith.mulf %183, %185 : vector<1x32xf32>
    %189 = arith.addf %187, %188 : vector<1x32xf32>
    %190 = math.tanh %189 : vector<1x32xf32>
    %191 = arith.mulf %186, %190 : vector<1x32xf32>
    %192 = arith.truncf %191 : vector<1x32xf32> to vector<1x32xbf16>
    %cst_29 = arith.constant dense<0.000000e+00> : vector<1x256xf32>
    %193 = tpu.matmul %192, %166, %cst_29 {dimension_numbers = #tpu.dot_dimension_numbers<[1], [0], [0], [1], [0, 0, 1, 1], [], []>} : vector<1x32xbf16>, vector<32x256xbf16>, vector<1x256xf32> -> vector<1x256xf32>
    %194 = vector.extract_strided_slice %193 {offsets = [0, 128], sizes = [1, 128], strides = [1, 1]} : vector<1x256xf32> to vector<1x128xf32>
    %195 = arith.addf %194, %2 : vector<1x128xf32>
    %196 = arith.negf %195 : vector<1x128xf32>
    %197 = math.exp %196 : vector<1x128xf32>
    %cst_30 = arith.constant 1.000000e+00 : f32
    %198 = vector.broadcast %cst_30 : f32 to vector<1x128xf32>
    %199 = arith.addf %198, %197 : vector<1x128xf32>
    %200 = arith.divf %198, %199 : vector<1x128xf32>
    %cst_31 = arith.constant 2.000000e+00 : f32
    %201 = vector.broadcast %cst_31 : f32 to vector<1x128xf32>
    %202 = arith.mulf %200, %201 : vector<1x128xf32>
    %c0_i32 = arith.constant 0 : i32
    %203 = vector.broadcast %c0_i32 : i32 to vector<1x128xi32>
    %204 = arith.cmpi eq, %167, %203 : vector<1x128xi32>
    %205 = arith.select %204, %202, %169 : vector<1x128xi1>, vector<1x128xf32>
    %206 = vector.extract_strided_slice %193 {offsets = [0, 0], sizes = [1, 128], strides = [1, 1]} : vector<1x256xf32> to vector<1x128xf32>
    %207 = vector.extract_strided_slice %0 {offsets = [9, 0], sizes = [1, 128], strides = [1, 1]} : vector<24x128xf32> to vector<1x128xf32>
    %208 = arith.mulf %202, %207 : vector<1x128xf32>
    %209 = arith.addf %206, %208 : vector<1x128xf32>
    %210 = vector.extract_strided_slice %0 {offsets = [1, 0], sizes = [1, 128], strides = [1, 1]} : vector<24x128xf32> to vector<1x128xf32>
    %211 = arith.addf %209, %210 : vector<1x128xf32>
    %212 = arith.negf %211 : vector<1x128xf32>
    %213 = math.exp %212 : vector<1x128xf32>
    %cst_32 = arith.constant 1.000000e+00 : f32
    %214 = vector.broadcast %cst_32 : f32 to vector<1x128xf32>
    %215 = arith.addf %214, %213 : vector<1x128xf32>
    %216 = arith.divf %214, %215 : vector<1x128xf32>
    %217 = math.tanh %211 : vector<1x128xf32>
    %218 = vector.extract_strided_slice %216 {offsets = [0, 0], sizes = [1, 32], strides = [1, 1]} : vector<1x128xf32> to vector<1x32xf32>
    %219 = vector.extract_strided_slice %216 {offsets = [0, 32], sizes = [1, 32], strides = [1, 1]} : vector<1x128xf32> to vector<1x32xf32>
    %220 = vector.extract_strided_slice %217 {offsets = [0, 64], sizes = [1, 32], strides = [1, 1]} : vector<1x128xf32> to vector<1x32xf32>
    %221 = vector.extract_strided_slice %216 {offsets = [0, 96], sizes = [1, 32], strides = [1, 1]} : vector<1x128xf32> to vector<1x32xf32>
    %222 = arith.mulf %219, %189 : vector<1x32xf32>
    %223 = arith.mulf %218, %220 : vector<1x32xf32>
    %224 = arith.addf %222, %223 : vector<1x32xf32>
    %225 = math.tanh %224 : vector<1x32xf32>
    %226 = arith.mulf %221, %225 : vector<1x32xf32>
    %227 = arith.truncf %226 : vector<1x32xf32> to vector<1x32xbf16>
    %cst_33 = arith.constant dense<0.000000e+00> : vector<1x256xf32>
    %228 = tpu.matmul %227, %166, %cst_33 {dimension_numbers = #tpu.dot_dimension_numbers<[1], [0], [0], [1], [0, 0, 1, 1], [], []>} : vector<1x32xbf16>, vector<32x256xbf16>, vector<1x256xf32> -> vector<1x256xf32>
    %229 = vector.extract_strided_slice %228 {offsets = [0, 128], sizes = [1, 128], strides = [1, 1]} : vector<1x256xf32> to vector<1x128xf32>
    %230 = arith.addf %229, %2 : vector<1x128xf32>
    %231 = arith.negf %230 : vector<1x128xf32>
    %232 = math.exp %231 : vector<1x128xf32>
    %cst_34 = arith.constant 1.000000e+00 : f32
    %233 = vector.broadcast %cst_34 : f32 to vector<1x128xf32>
    %234 = arith.addf %233, %232 : vector<1x128xf32>
    %235 = arith.divf %233, %234 : vector<1x128xf32>
    %cst_35 = arith.constant 2.000000e+00 : f32
    %236 = vector.broadcast %cst_35 : f32 to vector<1x128xf32>
    %237 = arith.mulf %235, %236 : vector<1x128xf32>
    %c1_i32 = arith.constant 1 : i32
    %238 = vector.broadcast %c1_i32 : i32 to vector<1x128xi32>
    %239 = arith.cmpi eq, %167, %238 : vector<1x128xi32>
    %240 = arith.select %239, %237, %205 : vector<1x128xi1>, vector<1x128xf32>
    %241 = vector.extract_strided_slice %228 {offsets = [0, 0], sizes = [1, 128], strides = [1, 1]} : vector<1x256xf32> to vector<1x128xf32>
    %242 = vector.extract_strided_slice %0 {offsets = [10, 0], sizes = [1, 128], strides = [1, 1]} : vector<24x128xf32> to vector<1x128xf32>
    %243 = arith.mulf %237, %242 : vector<1x128xf32>
    %244 = arith.addf %241, %243 : vector<1x128xf32>
    %245 = vector.extract_strided_slice %0 {offsets = [2, 0], sizes = [1, 128], strides = [1, 1]} : vector<24x128xf32> to vector<1x128xf32>
    %246 = arith.addf %244, %245 : vector<1x128xf32>
    %247 = arith.negf %246 : vector<1x128xf32>
    %248 = math.exp %247 : vector<1x128xf32>
    %cst_36 = arith.constant 1.000000e+00 : f32
    %249 = vector.broadcast %cst_36 : f32 to vector<1x128xf32>
    %250 = arith.addf %249, %248 : vector<1x128xf32>
    %251 = arith.divf %249, %250 : vector<1x128xf32>
    %252 = math.tanh %246 : vector<1x128xf32>
    %253 = vector.extract_strided_slice %251 {offsets = [0, 0], sizes = [1, 32], strides = [1, 1]} : vector<1x128xf32> to vector<1x32xf32>
    %254 = vector.extract_strided_slice %251 {offsets = [0, 32], sizes = [1, 32], strides = [1, 1]} : vector<1x128xf32> to vector<1x32xf32>
    %255 = vector.extract_strided_slice %252 {offsets = [0, 64], sizes = [1, 32], strides = [1, 1]} : vector<1x128xf32> to vector<1x32xf32>
    %256 = vector.extract_strided_slice %251 {offsets = [0, 96], sizes = [1, 32], strides = [1, 1]} : vector<1x128xf32> to vector<1x32xf32>
    %257 = arith.mulf %254, %224 : vector<1x32xf32>
    %258 = arith.mulf %253, %255 : vector<1x32xf32>
    %259 = arith.addf %257, %258 : vector<1x32xf32>
    %260 = math.tanh %259 : vector<1x32xf32>
    %261 = arith.mulf %256, %260 : vector<1x32xf32>
    %262 = arith.truncf %261 : vector<1x32xf32> to vector<1x32xbf16>
    %cst_37 = arith.constant dense<0.000000e+00> : vector<1x256xf32>
    %263 = tpu.matmul %262, %166, %cst_37 {dimension_numbers = #tpu.dot_dimension_numbers<[1], [0], [0], [1], [0, 0, 1, 1], [], []>} : vector<1x32xbf16>, vector<32x256xbf16>, vector<1x256xf32> -> vector<1x256xf32>
    %264 = vector.extract_strided_slice %263 {offsets = [0, 128], sizes = [1, 128], strides = [1, 1]} : vector<1x256xf32> to vector<1x128xf32>
    %265 = arith.addf %264, %2 : vector<1x128xf32>
    %266 = arith.negf %265 : vector<1x128xf32>
    %267 = math.exp %266 : vector<1x128xf32>
    %cst_38 = arith.constant 1.000000e+00 : f32
    %268 = vector.broadcast %cst_38 : f32 to vector<1x128xf32>
    %269 = arith.addf %268, %267 : vector<1x128xf32>
    %270 = arith.divf %268, %269 : vector<1x128xf32>
    %cst_39 = arith.constant 2.000000e+00 : f32
    %271 = vector.broadcast %cst_39 : f32 to vector<1x128xf32>
    %272 = arith.mulf %270, %271 : vector<1x128xf32>
    %c2_i32 = arith.constant 2 : i32
    %273 = vector.broadcast %c2_i32 : i32 to vector<1x128xi32>
    %274 = arith.cmpi eq, %167, %273 : vector<1x128xi32>
    %275 = arith.select %274, %272, %240 : vector<1x128xi1>, vector<1x128xf32>
    %276 = vector.extract_strided_slice %263 {offsets = [0, 0], sizes = [1, 128], strides = [1, 1]} : vector<1x256xf32> to vector<1x128xf32>
    %277 = vector.extract_strided_slice %0 {offsets = [11, 0], sizes = [1, 128], strides = [1, 1]} : vector<24x128xf32> to vector<1x128xf32>
    %278 = arith.mulf %272, %277 : vector<1x128xf32>
    %279 = arith.addf %276, %278 : vector<1x128xf32>
    %280 = vector.extract_strided_slice %0 {offsets = [3, 0], sizes = [1, 128], strides = [1, 1]} : vector<24x128xf32> to vector<1x128xf32>
    %281 = arith.addf %279, %280 : vector<1x128xf32>
    %282 = arith.negf %281 : vector<1x128xf32>
    %283 = math.exp %282 : vector<1x128xf32>
    %cst_40 = arith.constant 1.000000e+00 : f32
    %284 = vector.broadcast %cst_40 : f32 to vector<1x128xf32>
    %285 = arith.addf %284, %283 : vector<1x128xf32>
    %286 = arith.divf %284, %285 : vector<1x128xf32>
    %287 = math.tanh %281 : vector<1x128xf32>
    %288 = vector.extract_strided_slice %286 {offsets = [0, 0], sizes = [1, 32], strides = [1, 1]} : vector<1x128xf32> to vector<1x32xf32>
    %289 = vector.extract_strided_slice %286 {offsets = [0, 32], sizes = [1, 32], strides = [1, 1]} : vector<1x128xf32> to vector<1x32xf32>
    %290 = vector.extract_strided_slice %287 {offsets = [0, 64], sizes = [1, 32], strides = [1, 1]} : vector<1x128xf32> to vector<1x32xf32>
    %291 = vector.extract_strided_slice %286 {offsets = [0, 96], sizes = [1, 32], strides = [1, 1]} : vector<1x128xf32> to vector<1x32xf32>
    %292 = arith.mulf %289, %259 : vector<1x32xf32>
    %293 = arith.mulf %288, %290 : vector<1x32xf32>
    %294 = arith.addf %292, %293 : vector<1x32xf32>
    %295 = math.tanh %294 : vector<1x32xf32>
    %296 = arith.mulf %291, %295 : vector<1x32xf32>
    %297 = arith.truncf %296 : vector<1x32xf32> to vector<1x32xbf16>
    %cst_41 = arith.constant dense<0.000000e+00> : vector<1x256xf32>
    %298 = tpu.matmul %297, %166, %cst_41 {dimension_numbers = #tpu.dot_dimension_numbers<[1], [0], [0], [1], [0, 0, 1, 1], [], []>} : vector<1x32xbf16>, vector<32x256xbf16>, vector<1x256xf32> -> vector<1x256xf32>
    %299 = vector.extract_strided_slice %298 {offsets = [0, 128], sizes = [1, 128], strides = [1, 1]} : vector<1x256xf32> to vector<1x128xf32>
    %300 = arith.addf %299, %2 : vector<1x128xf32>
    %301 = arith.negf %300 : vector<1x128xf32>
    %302 = math.exp %301 : vector<1x128xf32>
    %cst_42 = arith.constant 1.000000e+00 : f32
    %303 = vector.broadcast %cst_42 : f32 to vector<1x128xf32>
    %304 = arith.addf %303, %302 : vector<1x128xf32>
    %305 = arith.divf %303, %304 : vector<1x128xf32>
    %cst_43 = arith.constant 2.000000e+00 : f32
    %306 = vector.broadcast %cst_43 : f32 to vector<1x128xf32>
    %307 = arith.mulf %305, %306 : vector<1x128xf32>
    %c3_i32 = arith.constant 3 : i32
    %308 = vector.broadcast %c3_i32 : i32 to vector<1x128xi32>
    %309 = arith.cmpi eq, %167, %308 : vector<1x128xi32>
    %310 = arith.select %309, %307, %275 : vector<1x128xi1>, vector<1x128xf32>
    %311 = vector.extract_strided_slice %298 {offsets = [0, 0], sizes = [1, 128], strides = [1, 1]} : vector<1x256xf32> to vector<1x128xf32>
    %312 = vector.extract_strided_slice %0 {offsets = [12, 0], sizes = [1, 128], strides = [1, 1]} : vector<24x128xf32> to vector<1x128xf32>
    %313 = arith.mulf %307, %312 : vector<1x128xf32>
    %314 = arith.addf %311, %313 : vector<1x128xf32>
    %315 = vector.extract_strided_slice %0 {offsets = [4, 0], sizes = [1, 128], strides = [1, 1]} : vector<24x128xf32> to vector<1x128xf32>
    %316 = arith.addf %314, %315 : vector<1x128xf32>
    %317 = arith.negf %316 : vector<1x128xf32>
    %318 = math.exp %317 : vector<1x128xf32>
    %cst_44 = arith.constant 1.000000e+00 : f32
    %319 = vector.broadcast %cst_44 : f32 to vector<1x128xf32>
    %320 = arith.addf %319, %318 : vector<1x128xf32>
    %321 = arith.divf %319, %320 : vector<1x128xf32>
    %322 = math.tanh %316 : vector<1x128xf32>
    %323 = vector.extract_strided_slice %321 {offsets = [0, 0], sizes = [1, 32], strides = [1, 1]} : vector<1x128xf32> to vector<1x32xf32>
    %324 = vector.extract_strided_slice %321 {offsets = [0, 32], sizes = [1, 32], strides = [1, 1]} : vector<1x128xf32> to vector<1x32xf32>
    %325 = vector.extract_strided_slice %322 {offsets = [0, 64], sizes = [1, 32], strides = [1, 1]} : vector<1x128xf32> to vector<1x32xf32>
    %326 = vector.extract_strided_slice %321 {offsets = [0, 96], sizes = [1, 32], strides = [1, 1]} : vector<1x128xf32> to vector<1x32xf32>
    %327 = arith.mulf %324, %294 : vector<1x32xf32>
    %328 = arith.mulf %323, %325 : vector<1x32xf32>
    %329 = arith.addf %327, %328 : vector<1x32xf32>
    %330 = math.tanh %329 : vector<1x32xf32>
    %331 = arith.mulf %326, %330 : vector<1x32xf32>
    %332 = arith.truncf %331 : vector<1x32xf32> to vector<1x32xbf16>
    %cst_45 = arith.constant dense<0.000000e+00> : vector<1x256xf32>
    %333 = tpu.matmul %332, %166, %cst_45 {dimension_numbers = #tpu.dot_dimension_numbers<[1], [0], [0], [1], [0, 0, 1, 1], [], []>} : vector<1x32xbf16>, vector<32x256xbf16>, vector<1x256xf32> -> vector<1x256xf32>
    %334 = vector.extract_strided_slice %333 {offsets = [0, 128], sizes = [1, 128], strides = [1, 1]} : vector<1x256xf32> to vector<1x128xf32>
    %335 = arith.addf %334, %2 : vector<1x128xf32>
    %336 = arith.negf %335 : vector<1x128xf32>
    %337 = math.exp %336 : vector<1x128xf32>
    %cst_46 = arith.constant 1.000000e+00 : f32
    %338 = vector.broadcast %cst_46 : f32 to vector<1x128xf32>
    %339 = arith.addf %338, %337 : vector<1x128xf32>
    %340 = arith.divf %338, %339 : vector<1x128xf32>
    %cst_47 = arith.constant 2.000000e+00 : f32
    %341 = vector.broadcast %cst_47 : f32 to vector<1x128xf32>
    %342 = arith.mulf %340, %341 : vector<1x128xf32>
    %c4_i32 = arith.constant 4 : i32
    %343 = vector.broadcast %c4_i32 : i32 to vector<1x128xi32>
    %344 = arith.cmpi eq, %167, %343 : vector<1x128xi32>
    %345 = arith.select %344, %342, %310 : vector<1x128xi1>, vector<1x128xf32>
    %346 = vector.extract_strided_slice %333 {offsets = [0, 0], sizes = [1, 128], strides = [1, 1]} : vector<1x256xf32> to vector<1x128xf32>
    %347 = vector.extract_strided_slice %0 {offsets = [13, 0], sizes = [1, 128], strides = [1, 1]} : vector<24x128xf32> to vector<1x128xf32>
    %348 = arith.mulf %342, %347 : vector<1x128xf32>
    %349 = arith.addf %346, %348 : vector<1x128xf32>
    %350 = vector.extract_strided_slice %0 {offsets = [5, 0], sizes = [1, 128], strides = [1, 1]} : vector<24x128xf32> to vector<1x128xf32>
    %351 = arith.addf %349, %350 : vector<1x128xf32>
    %352 = arith.negf %351 : vector<1x128xf32>
    %353 = math.exp %352 : vector<1x128xf32>
    %cst_48 = arith.constant 1.000000e+00 : f32
    %354 = vector.broadcast %cst_48 : f32 to vector<1x128xf32>
    %355 = arith.addf %354, %353 : vector<1x128xf32>
    %356 = arith.divf %354, %355 : vector<1x128xf32>
    %357 = math.tanh %351 : vector<1x128xf32>
    %358 = vector.extract_strided_slice %356 {offsets = [0, 0], sizes = [1, 32], strides = [1, 1]} : vector<1x128xf32> to vector<1x32xf32>
    %359 = vector.extract_strided_slice %356 {offsets = [0, 32], sizes = [1, 32], strides = [1, 1]} : vector<1x128xf32> to vector<1x32xf32>
    %360 = vector.extract_strided_slice %357 {offsets = [0, 64], sizes = [1, 32], strides = [1, 1]} : vector<1x128xf32> to vector<1x32xf32>
    %361 = vector.extract_strided_slice %356 {offsets = [0, 96], sizes = [1, 32], strides = [1, 1]} : vector<1x128xf32> to vector<1x32xf32>
    %362 = arith.mulf %359, %329 : vector<1x32xf32>
    %363 = arith.mulf %358, %360 : vector<1x32xf32>
    %364 = arith.addf %362, %363 : vector<1x32xf32>
    %365 = math.tanh %364 : vector<1x32xf32>
    %366 = arith.mulf %361, %365 : vector<1x32xf32>
    %367 = arith.truncf %366 : vector<1x32xf32> to vector<1x32xbf16>
    %cst_49 = arith.constant dense<0.000000e+00> : vector<1x256xf32>
    %368 = tpu.matmul %367, %166, %cst_49 {dimension_numbers = #tpu.dot_dimension_numbers<[1], [0], [0], [1], [0, 0, 1, 1], [], []>} : vector<1x32xbf16>, vector<32x256xbf16>, vector<1x256xf32> -> vector<1x256xf32>
    %369 = vector.extract_strided_slice %368 {offsets = [0, 128], sizes = [1, 128], strides = [1, 1]} : vector<1x256xf32> to vector<1x128xf32>
    %370 = arith.addf %369, %2 : vector<1x128xf32>
    %371 = arith.negf %370 : vector<1x128xf32>
    %372 = math.exp %371 : vector<1x128xf32>
    %cst_50 = arith.constant 1.000000e+00 : f32
    %373 = vector.broadcast %cst_50 : f32 to vector<1x128xf32>
    %374 = arith.addf %373, %372 : vector<1x128xf32>
    %375 = arith.divf %373, %374 : vector<1x128xf32>
    %cst_51 = arith.constant 2.000000e+00 : f32
    %376 = vector.broadcast %cst_51 : f32 to vector<1x128xf32>
    %377 = arith.mulf %375, %376 : vector<1x128xf32>
    %c5_i32 = arith.constant 5 : i32
    %378 = vector.broadcast %c5_i32 : i32 to vector<1x128xi32>
    %379 = arith.cmpi eq, %167, %378 : vector<1x128xi32>
    %380 = arith.select %379, %377, %345 : vector<1x128xi1>, vector<1x128xf32>
    %381 = vector.extract_strided_slice %368 {offsets = [0, 0], sizes = [1, 128], strides = [1, 1]} : vector<1x256xf32> to vector<1x128xf32>
    %382 = vector.extract_strided_slice %0 {offsets = [14, 0], sizes = [1, 128], strides = [1, 1]} : vector<24x128xf32> to vector<1x128xf32>
    %383 = arith.mulf %377, %382 : vector<1x128xf32>
    %384 = arith.addf %381, %383 : vector<1x128xf32>
    %385 = vector.extract_strided_slice %0 {offsets = [6, 0], sizes = [1, 128], strides = [1, 1]} : vector<24x128xf32> to vector<1x128xf32>
    %386 = arith.addf %384, %385 : vector<1x128xf32>
    %387 = arith.negf %386 : vector<1x128xf32>
    %388 = math.exp %387 : vector<1x128xf32>
    %cst_52 = arith.constant 1.000000e+00 : f32
    %389 = vector.broadcast %cst_52 : f32 to vector<1x128xf32>
    %390 = arith.addf %389, %388 : vector<1x128xf32>
    %391 = arith.divf %389, %390 : vector<1x128xf32>
    %392 = math.tanh %386 : vector<1x128xf32>
    %393 = vector.extract_strided_slice %391 {offsets = [0, 0], sizes = [1, 32], strides = [1, 1]} : vector<1x128xf32> to vector<1x32xf32>
    %394 = vector.extract_strided_slice %391 {offsets = [0, 32], sizes = [1, 32], strides = [1, 1]} : vector<1x128xf32> to vector<1x32xf32>
    %395 = vector.extract_strided_slice %392 {offsets = [0, 64], sizes = [1, 32], strides = [1, 1]} : vector<1x128xf32> to vector<1x32xf32>
    %396 = vector.extract_strided_slice %391 {offsets = [0, 96], sizes = [1, 32], strides = [1, 1]} : vector<1x128xf32> to vector<1x32xf32>
    %397 = arith.mulf %394, %364 : vector<1x32xf32>
    %398 = arith.mulf %393, %395 : vector<1x32xf32>
    %399 = arith.addf %397, %398 : vector<1x32xf32>
    %400 = math.tanh %399 : vector<1x32xf32>
    %401 = arith.mulf %396, %400 : vector<1x32xf32>
    %402 = arith.truncf %401 : vector<1x32xf32> to vector<1x32xbf16>
    %cst_53 = arith.constant dense<0.000000e+00> : vector<1x256xf32>
    %403 = tpu.matmul %402, %166, %cst_53 {dimension_numbers = #tpu.dot_dimension_numbers<[1], [0], [0], [1], [0, 0, 1, 1], [], []>} : vector<1x32xbf16>, vector<32x256xbf16>, vector<1x256xf32> -> vector<1x256xf32>
    %404 = vector.extract_strided_slice %403 {offsets = [0, 128], sizes = [1, 128], strides = [1, 1]} : vector<1x256xf32> to vector<1x128xf32>
    %405 = arith.addf %404, %2 : vector<1x128xf32>
    %406 = arith.negf %405 : vector<1x128xf32>
    %407 = math.exp %406 : vector<1x128xf32>
    %cst_54 = arith.constant 1.000000e+00 : f32
    %408 = vector.broadcast %cst_54 : f32 to vector<1x128xf32>
    %409 = arith.addf %408, %407 : vector<1x128xf32>
    %410 = arith.divf %408, %409 : vector<1x128xf32>
    %cst_55 = arith.constant 2.000000e+00 : f32
    %411 = vector.broadcast %cst_55 : f32 to vector<1x128xf32>
    %412 = arith.mulf %410, %411 : vector<1x128xf32>
    %c6_i32 = arith.constant 6 : i32
    %413 = vector.broadcast %c6_i32 : i32 to vector<1x128xi32>
    %414 = arith.cmpi eq, %167, %413 : vector<1x128xi32>
    %415 = arith.select %414, %412, %380 : vector<1x128xi1>, vector<1x128xf32>
    %416 = vector.extract_strided_slice %403 {offsets = [0, 0], sizes = [1, 128], strides = [1, 1]} : vector<1x256xf32> to vector<1x128xf32>
    %417 = vector.extract_strided_slice %0 {offsets = [15, 0], sizes = [1, 128], strides = [1, 1]} : vector<24x128xf32> to vector<1x128xf32>
    %418 = arith.mulf %412, %417 : vector<1x128xf32>
    %419 = arith.addf %416, %418 : vector<1x128xf32>
    %420 = vector.extract_strided_slice %0 {offsets = [7, 0], sizes = [1, 128], strides = [1, 1]} : vector<24x128xf32> to vector<1x128xf32>
    %421 = arith.addf %419, %420 : vector<1x128xf32>
    %422 = arith.negf %421 : vector<1x128xf32>
    %423 = math.exp %422 : vector<1x128xf32>
    %cst_56 = arith.constant 1.000000e+00 : f32
    %424 = vector.broadcast %cst_56 : f32 to vector<1x128xf32>
    %425 = arith.addf %424, %423 : vector<1x128xf32>
    %426 = arith.divf %424, %425 : vector<1x128xf32>
    %427 = math.tanh %421 : vector<1x128xf32>
    %428 = vector.extract_strided_slice %426 {offsets = [0, 0], sizes = [1, 32], strides = [1, 1]} : vector<1x128xf32> to vector<1x32xf32>
    %429 = vector.extract_strided_slice %426 {offsets = [0, 32], sizes = [1, 32], strides = [1, 1]} : vector<1x128xf32> to vector<1x32xf32>
    %430 = vector.extract_strided_slice %427 {offsets = [0, 64], sizes = [1, 32], strides = [1, 1]} : vector<1x128xf32> to vector<1x32xf32>
    %431 = vector.extract_strided_slice %426 {offsets = [0, 96], sizes = [1, 32], strides = [1, 1]} : vector<1x128xf32> to vector<1x32xf32>
    %432 = arith.mulf %429, %399 : vector<1x32xf32>
    %433 = arith.mulf %428, %430 : vector<1x32xf32>
    %434 = arith.addf %432, %433 : vector<1x32xf32>
    %435 = math.tanh %434 : vector<1x32xf32>
    %436 = arith.mulf %431, %435 : vector<1x32xf32>
    %437 = arith.truncf %436 : vector<1x32xf32> to vector<1x32xbf16>
    %438 = vector.extract_strided_slice %166 {offsets = [0, 128], sizes = [32, 128], strides = [1, 1]} : vector<32x256xbf16> to vector<32x128xbf16>
    %cst_57 = arith.constant dense<0.000000e+00> : vector<1x128xf32>
    %439 = tpu.matmul %437, %438, %cst_57 {dimension_numbers = #tpu.dot_dimension_numbers<[1], [0], [0], [1], [0, 0, 1, 1], [], []>} : vector<1x32xbf16>, vector<32x128xbf16>, vector<1x128xf32> -> vector<1x128xf32>
    %440 = arith.addf %439, %2 : vector<1x128xf32>
    %441 = arith.negf %440 : vector<1x128xf32>
    %442 = math.exp %441 : vector<1x128xf32>
    %cst_58 = arith.constant 1.000000e+00 : f32
    %443 = vector.broadcast %cst_58 : f32 to vector<1x128xf32>
    %444 = arith.addf %443, %442 : vector<1x128xf32>
    %445 = arith.divf %443, %444 : vector<1x128xf32>
    %cst_59 = arith.constant 2.000000e+00 : f32
    %446 = vector.broadcast %cst_59 : f32 to vector<1x128xf32>
    %447 = arith.mulf %445, %446 : vector<1x128xf32>
    %c7_i32 = arith.constant 7 : i32
    %448 = vector.broadcast %c7_i32 : i32 to vector<1x128xi32>
    %449 = arith.cmpi eq, %167, %448 : vector<1x128xi32>
    %450 = arith.select %449, %447, %415 : vector<1x128xi1>, vector<1x128xf32>
    %451 = arith.mulf %4, %450 : vector<1x128xf32>
    %452 = arith.addf %3, %451 : vector<1x128xf32>
    %c0_60 = arith.constant 0 : index
    %c0_61 = arith.constant 0 : index
    %453 = vector.load %arg3[%c0_60, %c0_61] : memref<1x128xf32, #tpu.memory_space<vmem>>, vector<1x128xf32>
    tpu.vector_store %arg3[%c0_60, %c0_61], %452 {strides = array<i32>} : memref<1x128xf32, #tpu.memory_space<vmem>>, vector<1x128xf32>,
    return
  }
}

</mosaic_0001>

<bundles_post_ra>
// kernel: tpu_custom_call.1
= control target key start
LH: loop header
LB: loop body
LE: loop exit
PB: predicated region body
PF: predicated region fallthrough
CT: control target
= control target key end

     0   :  { %8 = vsyncpa [#allocation3], 0  ;;  %s2329_s0 = inlined_call_operand.hbm [shape: f32[8,8], index: 0, kind: input, shape index: {}]   ;;  %s2330_s1 = inlined_call_operand.hbm [shape: bf16[80,256], index: 1, kind: input, shape index: {}]   ;;  %s2331_s2 = inlined_call_operand.hbm [shape: f32[24,128], index: 2, kind: input, shape index: {}]   ;;  %s2332_s3 = inlined_call_operand.hbm [shape: f32[1,128], index: 3, kind: output, shape index: {}]  }
   0x1   :  { %9 = vsyncpa [#allocation6], 0 }
   0x2   :  { %10 = vsyncpa [#allocation4], 0  ;;  %s1998_s12 = smov [#allocation5]   ;;  %s1904_s16 = scalar_lea.hbm %s2330_s1, 1280 }
   0x3   :  { %s26_s13 = sshll.u32 %s1998_s12, 4  ;;  %p1905_p0 = scmp.ne.s32.totalorder %s2330_s1, %s1904_s16  ;;  %s27_s13 = int_to_ptr.vmem [resolvable:$true] %s26_s13 }
   0x4   :  { %p1908_p1 = scmp.lt.u32.totalorder %s1904_s16, %s2330_s1 }
   0x6   :  { %p1910_p2 = pnand %p1908_p1, %p1905_p0 }
   0x8   :  { %1913 = shalt.err (!%p1910_p2)
}
   0x9   :  { %s1914_s21 = scalar_lea.vmem %s27_s13, 1280  ;;  %p1919_p4 = scmp.lt.s32.totalorder %s27_s13, %s27_s13 }
   0xa   :  { %p1915_p3 = scmp.ne.s32.totalorder %s27_s13, %s1914_s21  ;;  %p1920_p5 = scmp.lt.s32.totalorder %s1914_s21, %s1914_s21 }
   0xc   :  { %p1921_p6 = por %p1920_p5, %p1919_p4 }
   0xe   :  { %p1922_p7 = pnand %p1921_p6, %p1915_p3 }
  0x10   :  { %1925 = shalt.err (!%p1922_p7)
}
  0x11   :  { %s1999_s22 = smov 128   ;;  %s2000_s23 = smov 8  }
  0x12   :  { %32 = dma.hbm_to_vmem [thread:$0]  %s2330_s1, 1280, %s27_s13, [#allocation6], %s1999_s22, %s1999_s22, %s2000_s23  }
  0x13   :  { %s2001_s26 = smov [#allocation2]   ;;  %s2002_s28 = smov [#allocation7]  }
  0x14   :  { %s17_s27 = sshll.u32 %s2001_s26, 4  ;;  %s38_s29 = sshll.u32 %s2002_s28, 4  ;;  %s18_s27 = int_to_ptr.vmem [resolvable:$true] %s17_s27  ;;  %s39_s29 = int_to_ptr.vmem [resolvable:$true] %s38_s29 }
  0x15   :  { %s1926_s5 = scalar_lea.hbm %s2329_s0, 128 }
  0x16   :  { %p1927_p8 = scmp.ne.s32.totalorder %s2329_s0, %s1926_s5  ;;  %p1930_p9 = scmp.lt.u32.totalorder %s1926_s5, %s2329_s0 }
  0x18   :  { %p1932_p10 = pnand %p1930_p9, %p1927_p8 }
  0x1a   :  { %1935 = shalt.err (!%p1932_p10)
}
  0x1b   :  { %s1936_s1 = scalar_lea.vmem %s18_s27, 128  ;;  %p1941_p12 = scmp.lt.s32.totalorder %s18_s27, %s18_s27 }
  0x1c   :  { %p1937_p11 = scmp.ne.s32.totalorder %s18_s27, %s1936_s1  ;;  %p1942_p13 = scmp.lt.s32.totalorder %s1936_s1, %s1936_s1 }
  0x1e   :  { %p1943_p0 = por %p1942_p13, %p1941_p12 }
  0x20   :  { %p1944_p1 = pnand %p1943_p0, %p1937_p11 }
  0x22   :  { %1947 = shalt.err (!%p1944_p1)
}
  0x23   :  { %20 = dma.hbm_to_vmem [thread:$0]  %s2329_s0, 128, %s18_s27, [#allocation3]  }
  0x24   :  { %s1948_s14 = scalar_lea.hbm %s2331_s2, 384 }
  0x25   :  { %p1949_p2 = scmp.ne.s32.totalorder %s2331_s2, %s1948_s14  ;;  %p1952_p3 = scmp.lt.u32.totalorder %s1948_s14, %s2331_s2 }
  0x27   :  { %p1954_p4 = pnand %p1952_p3, %p1949_p2 }
  0x29   :  { %1957 = shalt.err (!%p1954_p4)
}
  0x2a   :  { %s1958_s19 = scalar_lea.vmem %s39_s29, 384  ;;  %p1963_p6 = scmp.lt.s32.totalorder %s39_s29, %s39_s29 }
  0x2b   :  { %p1959_p5 = scmp.ne.s32.totalorder %s39_s29, %s1958_s19  ;;  %p1964_p7 = scmp.lt.s32.totalorder %s1958_s19, %s1958_s19 }
  0x2d   :  { %p1965_p8 = por %p1964_p7, %p1963_p6 }
  0x2f   :  { %p1966_p9 = pnand %p1965_p8, %p1959_p5 }
  0x31   :  { %1969 = shalt.err (!%p1966_p9)
}
  0x32   :  { %44 = dma.hbm_to_vmem [thread:$0]  %s2331_s2, 384, %s39_s29, [#allocation6], %s1999_s22, %s1999_s22, %s2000_s23  }
  0x33   :  { %1992 = dma.done.wait [#allocation3], 128  }
  0x34   :  { %1993 = vsyncadd [#allocation3], 4294967168 }
  0x35   :  { %1994 = dma.done.wait [#allocation6], 1664  }
  0x36   :  { %1995 = vsyncadd [#allocation6], 4294965632  ;;  %v2003_v0 = vmov 0.0   ;;  %vm2004_vm0 = vmmov 0   ;;  %vm69_vm1 = vcmask 1043456   ;;  %v58_v4 = vld [vmem:[#allocation2] sm:$0xff]  ;;  %v61_v8 = vlaneseq }
  0x37   :  { %1646 = vmatprep.subr.bf16.mxu0 %v2003_v0  ;;  %1652 = vmatprep.subr.bf16.mxu1 %v2003_v0  ;;  %v60_v1 = vld [vmem:[#allocation5] sm:$0xf]  ;;  %v2077_v3 = vld [vmem:[#allocation5 + $0x10] ss:$8 sps:$4 sm:$0xff]   ;;  %v59_v5 = vpack.c.bf16 %v58_v4, %v58_v4  ;;  %vm65_vm2 = vcmask 64512   ;;  %v2005_v7 = vmov 0  }
  0x38   :  { %1648 = vmatprep.mubr.msk.bf16.mxu0 %vm2004_vm0, %v2003_v0  ;;  %1656 = vmatprep.mubr.msk.bf16.mxu1 %vm2004_vm0, %v2003_v0  ;;  %v71_v2 = vsel %vm69_vm1, %v60_v1, 0  ;;  %v2079_v6 = vld [vmem:[#allocation5 + $0x20] ss:$8 sps:$4 sm:$0xff]   ;;  %v62_v9 = vshrl.u32 %v61_v8, 7  ;;  %s2006_s2 = smov 64   ;;  %s2007_s21 = smov 32  }
  0x39   :  { %1647 = vmatpush3.bf16.msra.mxu0 %v71_v2  ;;  %1653 = vmatpush3.bf16.msra.mxu1 %v2077_v3  ;;  %v2100_v11 = vld [vmem:[#allocation7 + $0x10] sm:$0xff]  ;;  %vm129_vm3 = vcmask 261120   ;;  %s2008_s22 = smov [#allocation8]  }
  0x3a   :  { %1660 = vmatprep.subr.bf16.mxu0 %v2003_v0  ;;  %1654 = vmatprep.subr.bf16.mxu1 %v2003_v0  ;;  %v63_v10 = vsub.s32 0, %v62_v9  ;;  %s1560_s23 = sshll.u32 %s2008_s22, 4  ;;  %s1561_s23 = int_to_ptr.vmem [resolvable:$true] %s1560_s23 }
  0x3b   :  { %s1970_s24 = scalar_lea.vmem %s1561_s23, 16  ;;  %s1974_s25 = scalar_lea.vmem %s1561_s23, 32 }
  0x3c   :  { %1649 = vmatmul.mubr.msk.bf16.vlgmr.msra.gmra.mrb[0].mxu0 %vm65_vm2, %v59_v5  ;;  %v64_v12 = vrot.slane %v2100_v11, %v63_v10  ;;  %p1971_p10 = scmp.ne.s32.totalorder %s1561_s23, %s1970_s24  ;;  %p1975_p11 = scmp.lt.s32.totalorder %s1561_s23, %s1561_s23 }
  0x3d   :  { %1661 = vmatpush3.bf16.msra.mxu0 %v2077_v3  ;;  %1664 = vmatprep.mubr.msk.bf16.mxu0 %vm2004_vm0, %v2003_v0  ;;  %p1976_p12 = scmp.lt.s32.totalorder %s1974_s25, %s1970_s24 }
  0x3e   :  { %1655 = vmatpush3.bf16.msra.mxu1 %v2079_v6  ;;  %1662 = vmatprep.subr.bf16.mxu0 %v2003_v0 }
  0x3f   :  { %1668 = vmatprep.subr.bf16.mxu1 %v2003_v0  ;;  %p1977_p13 = por %p1976_p12, %p1975_p11 }
  0x41   :  { %1657 = vmatmul.mubr.bf16.vlgmr.msra.gmra.mrb[0].mxu1 %v2005_v7  ;;  %1663 = vmatpush3.bf16.msra.mxu0 %v2079_v6  ;;  %p1978_p0 = pnand %p1977_p13, %p1971_p10 }
  0x42   :  { %1669 = vmatpush3.bf16.msra.mxu1 %v2077_v3  ;;  %1672 = vmatprep.mubr.msk.bf16.mxu1 %vm2004_vm0, %v2003_v0 }
  0x43   :  { %1670 = vmatprep.subr.bf16.mxu1 %v2003_v0  ;;  %1676 = vmatprep.subr.bf16.mxu0 %v2003_v0 }
  0x46   :  { %1671 = vmatpush3.bf16.msra.mxu1 %v2079_v6 }
  0x47   :  { %1684 = vmatprep.subr.bf16.mxu1 %v2003_v0 }
 0x10f   :  { %v107_v13 = vpop.f32.mrb[0].mxu0 }
 0x110   :  { %v1650_v14 = vpop.f32.mrb[1].mxu0  ;;  %v2103_v15 = vadd.f32 %v107_v13, %v64_v12 }
 0x111   :  { %v110_v16 = vpop.f32.mrb[2].mxu0 }
 0x112   :  { %v1651_v17 = vpop.f32.mrb[3].mxu0 }
 0x114   :  { %v167_v18 = vpop.f32.mrb[0].mxu1 }
 0x115   :  { %v173_v19 = vadd.f32 %v167_v18, %v2103_v15  ;;  %v1658_v20 = vpop.f32.mrb[1].mxu1 }
 0x116   :  { %v170_v21 = vpop.f32.mrb[2].mxu1 }
 0x117   :  { %1743 = vtanh.f32 %v173_v19  ;;  %v1659_v22 = vpop.f32.mrb[3].mxu1  ;;  %v1573_v24 = vmul.f32 -1.442695, %v173_v19 }
 0x119   :  { %1745 = vpow2.f32 %v1573_v24 }
 0x121   :  { %v1744_v23 = vpop.eup %1743 }
 0x122   :  { %183 = vrot.lane.b32.xlu0 %v1744_v23, %s2006_s2 }
 0x123   :  { %v1746_v25 = vpop.eup %1745 }
 0x124   :  { %v177_v26 = vadd.f32 1.0, %v1746_v25 }
 0x126   :  { %1747 = vrcp.f32 %v177_v26 }
 0x130   :  { %v1748_v27 = vpop.eup %1747 }
 0x131   :  { %v181_v30 = vmul.f32 0.0, %v1748_v27 }
 0x194   :  { %v184_v28 = vpop.permute.xlu0 %183 }
 0x195   :  { %v186_v29 = vmul.f32 %v1748_v27, %v184_v28 }
 0x197   :  { %188 = vrot.lane.b32.xlu0 %v186_v29, %s2007_s21 }
 0x209   :  { %v189_v31 = vpop.permute.xlu0 %188 }
 0x20a   :  { %v191_v32 = vadd.f32 %v189_v31, %v181_v30 }
 0x20c   :  { %1749 = vtanh.f32 %v191_v32  ;;  %v257_v51 = vrot.slane %v191_v32, 7 }
 0x216   :  { %v1750_v33 = vpop.eup %1749 }
 0x217   :  { %194 = vrot.lane.b32.xlu1 %v1750_v33, %s2006_s2 }
 0x289   :  { %v195_v34 = vpop.permute.xlu1 %194 }
 0x28a   :  { %v197_v35 = vmul.f32 %v1748_v27, %v195_v34 }
 0x28c   :  { %v198_v36 = vpack.c.bf16 %v197_v35, %v197_v35 }
 0x28e   :  { %200 = vrot.lane.b32.xlu1 %v198_v36, %s2007_s21 }
 0x300   :  { %v201_v37 = vpop.permute.xlu1 %200 }
 0x301   :  { %1665 = vmatmul.mubr.msk.bf16.vlgmr.msra.gmra.mrb[4].mxu0 %vm129_vm3, %v201_v37 }
 0x302   :  { %1677 = vmatpush3.bf16.msra.mxu0 %v2077_v3  ;;  %1680 = vmatprep.mubr.msk.bf16.mxu0 %vm2004_vm0, %v2003_v0 }
 0x303   :  { %1678 = vmatprep.subr.bf16.mxu0 %v2003_v0 }
 0x306   :  { %1679 = vmatpush3.bf16.msra.mxu0 %v2079_v6 }
 0x307   :  { %1692 = vmatprep.subr.bf16.mxu0 %v2003_v0 }
 0x3d4   :  { %v239_v38 = vpop.f32.mrb[4].mxu0 }
 0x3d5   :  { %v246_v39 = vrot.slane %v239_v38, 7  ;;  %v1666_v40 = vpop.f32.mrb[5].mxu0 }
 0x3d6   :  { %v242_v41 = vpop.f32.mrb[6].mxu0 }
 0x3d7   :  { %v248_v42 = vadd.f32 %v246_v39, %v2103_v15  ;;  %v1667_v43 = vpop.f32.mrb[7].mxu0 }
 0x3d9   :  { %1751 = vtanh.f32 %v248_v42  ;;  %v1575_v45 = vmul.f32 -1.442695, %v248_v42 }
 0x3db   :  { %1753 = vpow2.f32 %v1575_v45 }
 0x3e3   :  { %v1752_v44 = vpop.eup %1751 }
 0x3e4   :  { %261 = vrot.lane.b32.xlu0 %v1752_v44, %s2006_s2 }
 0x3e5   :  { %v1754_v46 = vpop.eup %1753 }
 0x3e6   :  { %v252_v47 = vadd.f32 1.0, %v1754_v46 }
 0x3e8   :  { %1755 = vrcp.f32 %v252_v47 }
 0x3f2   :  { %v1756_v48 = vpop.eup %1755 }
 0x3f3   :  { %v259_v52 = vmul.f32 %v1756_v48, %v257_v51 }
 0x456   :  { %v262_v49 = vpop.permute.xlu0 %261 }
 0x457   :  { %v264_v50 = vmul.f32 %v1756_v48, %v262_v49 }
 0x459   :  { %266 = vrot.lane.b32.xlu1 %v264_v50, %s2007_s21 }
 0x4cb   :  { %v267_v53 = vpop.permute.xlu1 %266 }
 0x4cc   :  { %v269_v54 = vadd.f32 %v267_v53, %v259_v52 }
 0x4ce   :  { %1757 = vtanh.f32 %v269_v54  ;;  %v337_v17 = vrot.slane %v269_v54, 7 }
 0x4d8   :  { %v1758_v55 = vpop.eup %1757 }
 0x4d9   :  { %272 = vrot.lane.b32.xlu0 %v1758_v55, %s2006_s2 }
 0x54b   :  { %v273_v56 = vpop.permute.xlu0 %272 }
 0x54c   :  { %v275_v57 = vmul.f32 %v1756_v48, %v273_v56 }
 0x54e   :  { %v276_v58 = vpack.c.bf16 %v275_v57, %v275_v57 }
 0x550   :  { %v278_v59 = vshrl.u32 %v276_v58, 16 }
 0x552   :  { %280 = vrot.lane.b32.xlu1 %v278_v59, %s2007_s21 }
 0x5c4   :  { %v281_v60 = vpop.permute.xlu1 %280 }
 0x5c5   :  { %1673 = vmatmul.mubr.msk.bf16.vlgmr.msra.gmra.mrb[4].mxu1 %vm129_vm3, %v281_v60 }
 0x5c6   :  { %1685 = vmatpush3.bf16.msra.mxu1 %v2077_v3  ;;  %1688 = vmatprep.mubr.msk.bf16.mxu1 %vm2004_vm0, %v2003_v0 }
 0x5c7   :  { %1686 = vmatprep.subr.bf16.mxu1 %v2003_v0 }
 0x5ca   :  { %1687 = vmatpush3.bf16.msra.mxu1 %v2079_v6 }
 0x5cb   :  { %1700 = vmatprep.subr.bf16.mxu1 %v2003_v0 }
 0x698   :  { %v319_v61 = vpop.f32.mrb[4].mxu1 }
 0x699   :  { %v326_v62 = vrot.slane %v319_v61, 6  ;;  %v1674_v63 = vpop.f32.mrb[5].mxu1 }
 0x69a   :  { %v322_v1 = vpop.f32.mrb[6].mxu1 }
 0x69b   :  { %v328_v2 = vadd.f32 %v326_v62, %v2103_v15  ;;  %v1675_v4 = vpop.f32.mrb[7].mxu1 }
 0x69d   :  { %1759 = vtanh.f32 %v328_v2  ;;  %v1577_v9 = vmul.f32 -1.442695, %v328_v2 }
 0x69f   :  { %1761 = vpow2.f32 %v1577_v9 }
 0x6a7   :  { %v1760_v5 = vpop.eup %1759 }
 0x6a8   :  { %341 = vrot.lane.b32.xlu0 %v1760_v5, %s2006_s2 }
 0x6a9   :  { %v1762_v10 = vpop.eup %1761 }
 0x6aa   :  { %v332_v12 = vadd.f32 1.0, %v1762_v10 }
 0x6ac   :  { %1763 = vrcp.f32 %v332_v12 }
 0x6b6   :  { %v1764_v13 = vpop.eup %1763 }
 0x6b7   :  { %v339_v18 = vmul.f32 %v1764_v13, %v337_v17 }
 0x71a   :  { %v342_v14 = vpop.permute.xlu0 %341 }
 0x71b   :  { %v344_v16 = vmul.f32 %v1764_v13, %v342_v14 }
 0x71d   :  { %346 = vrot.lane.b32.xlu1 %v344_v16, %s2007_s21 }
 0x78f   :  { %v347_v19 = vpop.permute.xlu1 %346 }
 0x790   :  { %v349_v20 = vadd.f32 %v347_v19, %v339_v18 }
 0x792   :  { %1765 = vtanh.f32 %v349_v20  ;;  %v416_v40 = vrot.slane %v349_v20, 7 }
 0x79c   :  { %v1766_v21 = vpop.eup %1765 }
 0x79d   :  { %352 = vrot.lane.b32.xlu0 %v1766_v21, %s2006_s2 }
 0x80f   :  { %v353_v22 = vpop.permute.xlu0 %352 }
 0x810   :  { %v355_v23 = vmul.f32 %v1764_v13, %v353_v22 }
 0x812   :  { %v356_v24 = vpack.c.bf16 %v355_v23, %v355_v23 }
 0x814   :  { %v358_v25 = vrot.slane %v356_v24, 1 }
 0x816   :  { %359 = vrot.lane.b32.xlu1 %v358_v25, %s2007_s21 }
 0x888   :  { %v360_v26 = vpop.permute.xlu1 %359 }
 0x889   :  { %1681 = vmatmul.mubr.msk.bf16.vlgmr.msra.gmra.mrb[8].mxu0 %vm129_vm3, %v360_v26 }
 0x88a   :  { %1693 = vmatpush3.bf16.msra.mxu0 %v2077_v3  ;;  %1696 = vmatprep.mubr.msk.bf16.mxu0 %vm2004_vm0, %v2003_v0 }
 0x88b   :  { %1694 = vmatprep.subr.bf16.mxu0 %v2003_v0 }
 0x88e   :  { %1695 = vmatpush3.bf16.msra.mxu0 %v2079_v6 }
 0x88f   :  { %1708 = vmatprep.subr.bf16.mxu0 %v2003_v0 }
 0x95c   :  { %v398_v27 = vpop.f32.mrb[8].mxu0 }
 0x95d   :  { %v405_v28 = vrot.slane %v398_v27, 5  ;;  %v1682_v29 = vpop.f32.mrb[9].mxu0 }
 0x95e   :  { %v401_v30 = vpop.f32.mrb[10].mxu0 }
 0x95f   :  { %v407_v31 = vadd.f32 %v405_v28, %v2103_v15  ;;  %v1683_v32 = vpop.f32.mrb[11].mxu0 }
 0x961   :  { %1767 = vtanh.f32 %v407_v31  ;;  %v1579_v34 = vmul.f32 -1.442695, %v407_v31 }
 0x963   :  { %1769 = vpow2.f32 %v1579_v34 }
 0x96b   :  { %v1768_v33 = vpop.eup %1767 }
 0x96c   :  { %420 = vrot.lane.b32.xlu0 %v1768_v33, %s2006_s2 }
 0x96d   :  { %v1770_v35 = vpop.eup %1769 }
 0x96e   :  { %v411_v36 = vadd.f32 1.0, %v1770_v35 }
 0x970   :  { %1771 = vrcp.f32 %v411_v36 }
 0x97a   :  { %v1772_v37 = vpop.eup %1771 }
 0x97b   :  { %v418_v41 = vmul.f32 %v1772_v37, %v416_v40 }
 0x9de   :  { %v421_v38 = vpop.permute.xlu0 %420 }
 0x9df   :  { %v423_v39 = vmul.f32 %v1772_v37, %v421_v38 }
 0x9e1   :  { %425 = vrot.lane.b32.xlu1 %v423_v39, %s2007_s21 }
 0xa53   :  { %v426_v42 = vpop.permute.xlu1 %425 }
 0xa54   :  { %v428_v43 = vadd.f32 %v426_v42, %v418_v41 }
 0xa56   :  { %1773 = vtanh.f32 %v428_v43  ;;  %v497_v1 = vrot.slane %v428_v43, 7 }
 0xa60   :  { %v1774_v44 = vpop.eup %1773 }
 0xa61   :  { %431 = vrot.lane.b32.xlu0 %v1774_v44, %s2006_s2 }
 0xad3   :  { %v432_v45 = vpop.permute.xlu0 %431 }
 0xad4   :  { %v434_v46 = vmul.f32 %v1772_v37, %v432_v45 }
 0xad6   :  { %v435_v47 = vpack.c.bf16 %v434_v46, %v434_v46 }
 0xad8   :  { %v437_v48 = vshrl.u32 %v435_v47, 16 }
 0xada   :  { %v439_v49 = vrot.slane %v437_v48, 1 }
 0xadc   :  { %440 = vrot.lane.b32.xlu1 %v439_v49, %s2007_s21 }
 0xb4e   :  { %v441_v50 = vpop.permute.xlu1 %440 }
 0xb4f   :  { %1689 = vmatmul.mubr.msk.bf16.vlgmr.msra.gmra.mrb[8].mxu1 %vm129_vm3, %v441_v50 }
 0xb50   :  { %1701 = vmatpush3.bf16.msra.mxu1 %v2077_v3  ;;  %1704 = vmatprep.mubr.msk.bf16.mxu1 %vm2004_vm0, %v2003_v0 }
 0xb51   :  { %1702 = vmatprep.subr.bf16.mxu1 %v2003_v0 }
 0xb54   :  { %1703 = vmatpush3.bf16.msra.mxu1 %v2079_v6 }
 0xc22   :  { %v479_v51 = vpop.f32.mrb[8].mxu1 }
 0xc23   :  { %v486_v52 = vrot.slane %v479_v51, 4  ;;  %v1690_v53 = vpop.f32.mrb[9].mxu1 }
 0xc24   :  { %v482_v54 = vpop.f32.mrb[10].mxu1 }
 0xc25   :  { %v488_v55 = vadd.f32 %v486_v52, %v2103_v15  ;;  %v1691_v56 = vpop.f32.mrb[11].mxu1 }
 0xc27   :  { %1775 = vtanh.f32 %v488_v55  ;;  %v1581_v58 = vmul.f32 -1.442695, %v488_v55 }
 0xc29   :  { %1777 = vpow2.f32 %v1581_v58 }
 0xc31   :  { %v1776_v57 = vpop.eup %1775 }
 0xc32   :  { %501 = vrot.lane.b32.xlu0 %v1776_v57, %s2006_s2 }
 0xc33   :  { %v1778_v59 = vpop.eup %1777 }
 0xc34   :  { %v492_v60 = vadd.f32 1.0, %v1778_v59 }
 0xc36   :  { %1779 = vrcp.f32 %v492_v60 }
 0xc40   :  { %v1780_v61 = vpop.eup %1779 }
 0xc41   :  { %v499_v2 = vmul.f32 %v1780_v61, %v497_v1 }
 0xca4   :  { %v502_v62 = vpop.permute.xlu0 %501 }
 0xca5   :  { %v504_v63 = vmul.f32 %v1780_v61, %v502_v62 }
 0xca7   :  { %506 = vrot.lane.b32.xlu1 %v504_v63, %s2007_s21 }
 0xd19   :  { %v507_v4 = vpop.permute.xlu1 %506 }
 0xd1a   :  { %v509_v5 = vadd.f32 %v507_v4, %v499_v2 }
 0xd1c   :  { %1781 = vtanh.f32 %v509_v5 }
 0xd26   :  { %v1782_v9 = vpop.eup %1781 }
 0xd27   :  { %512 = vrot.lane.b32.xlu0 %v1782_v9, %s2006_s2 }
 0xd99   :  { %v513_v10 = vpop.permute.xlu0 %512 }
 0xd9a   :  { %v515_v12 = vmul.f32 %v1780_v61, %v513_v10 }
 0xd9c   :  { %v516_v13 = vpack.c.bf16 %v515_v12, %v515_v12 }
 0xd9e   :  { %v518_v14 = vrot.slane %v516_v13, 2 }
 0xda0   :  { %519 = vrot.lane.b32.xlu1 %v518_v14, %s2007_s21 }
 0xe12   :  { %v520_v16 = vpop.permute.xlu1 %519 }
 0xe13   :  { %1697 = vmatmul.mubr.msk.bf16.vlgmr.msra.gmra.mrb[12].mxu0 %vm129_vm3, %v520_v16 }
 0xe14   :  { %1709 = vmatpush3.bf16.msra.mxu0 %v2077_v3  ;;  %1712 = vmatprep.mubr.msk.bf16.mxu0 %vm2004_vm0, %v2003_v0 }
 0xe15   :  { %1710 = vmatprep.subr.bf16.mxu0 %v2003_v0 }
 0xe18   :  { %1711 = vmatpush3.bf16.msra.mxu0 %v2079_v6  ;;  %v576_v6 = vrot.slane %v509_v5, 7 }
 0xee6   :  { %v558_v17 = vpop.f32.mrb[12].mxu0 }
 0xee7   :  { %v565_v18 = vrot.slane %v558_v17, 3  ;;  %v1698_v19 = vpop.f32.mrb[13].mxu0 }
 0xee8   :  { %v561_v20 = vpop.f32.mrb[14].mxu0 }
 0xee9   :  { %v567_v21 = vadd.f32 %v565_v18, %v2103_v15  ;;  %v1699_v22 = vpop.f32.mrb[15].mxu0 }
 0xeea   :  { %v2182_v22 = vld [vmem:[#allocation5 + $0x30] ss:$8 sps:$4 sm:$0xff]  }
 0xeeb   :  { %1783 = vtanh.f32 %v567_v21  ;;  %v1583_v24 = vmul.f32 -1.442695, %v567_v21 }
 0xeed   :  { %1785 = vpow2.f32 %v1583_v24  ;;  %v2189_v24 = vld [vmem:[#allocation5 + $0x40] ss:$8 sps:$4 sm:$0xff]  }
 0xef5   :  { %v1784_v23 = vpop.eup %1783 }
 0xef6   :  { %580 = vrot.lane.b32.xlu0 %v1784_v23, %s2006_s2  ;;  %v2184_v23 = vld [vmem:[#allocation5 + $0x44] ss:$8 sps:$4 sm:$0xff]  }
 0xef7   :  { %v1786_v3 = vpop.eup %1785 }
 0xef8   :  { %v571_v25 = vadd.f32 1.0, %v1786_v3 }
 0xefa   :  { %1787 = vrcp.f32 %v571_v25 }
 0xf04   :  { %v1788_v26 = vpop.eup %1787 }
 0xf05   :  { %v578_v29 = vmul.f32 %v1788_v26, %v576_v6 }
 0xf68   :  { %v581_v27 = vpop.permute.xlu0 %580 }
 0xf69   :  { %v583_v28 = vmul.f32 %v1788_v26, %v581_v27 }
 0xf6b   :  { %585 = vrot.lane.b32.xlu1 %v583_v28, %s2007_s21 }
 0xfdd   :  { %v586_v30 = vpop.permute.xlu1 %585 }
 0xfde   :  { %v588_v31 = vadd.f32 %v586_v30, %v578_v29  ;;  %v2206_v30 = vld [vmem:[#allocation7 + $0x8] sm:$0xff] }
 0xfe0   :  { %1789 = vtanh.f32 %v588_v31  ;;  %v657_v52 = vrot.slane %v588_v31, 7  ;;  %v831_v31 = vmul.f32 0.0, %v2206_v30 }
 0xfea   :  { %v1790_v32 = vpop.eup %1789 }
 0xfeb   :  { %591 = vrot.lane.b32.xlu0 %v1790_v32, %s2006_s2  ;;  %v2209_v32 = vld [vmem:[#allocation7] sm:$0xff] }
0x105d   :  { %v592_v33 = vpop.permute.xlu0 %591 }
0x105e   :  { %v594_v34 = vmul.f32 %v1788_v26, %v592_v33 }
0x1060   :  { %v595_v35 = vpack.c.bf16 %v594_v34, %v594_v34 }
0x1062   :  { %v597_v36 = vshrl.u32 %v595_v35, 16 }
0x1064   :  { %v599_v37 = vrot.slane %v597_v36, 2 }
0x1066   :  { %600 = vrot.lane.b32.xlu1 %v599_v37, %s2007_s21 }
0x10d8   :  { %v601_v38 = vpop.permute.xlu1 %600 }
0x10d9   :  { %1705 = vmatmul.mubr.msk.bf16.vlgmr.msra.gmra.mrb[12].mxu1 %vm129_vm3, %v601_v38 }
0x10da   :  { %823 = vmatprep.mubr.bf16.mxu1 %v2005_v7 }
0x11ac   :  { %v639_v39 = vpop.f32.mrb[12].mxu1 }
0x11ad   :  { %v646_v40 = vrot.slane %v639_v39, 2  ;;  %v1706_v41 = vpop.f32.mrb[13].mxu1 }
0x11ae   :  { %v642_v42 = vpop.f32.mrb[14].mxu1 }
0x11af   :  { %v648_v43 = vadd.f32 %v646_v40, %v2103_v15  ;;  %v1707_v44 = vpop.f32.mrb[15].mxu1 }
0x11b1   :  { %1791 = vtanh.f32 %v648_v43  ;;  %v1585_v46 = vmul.f32 -1.442695, %v648_v43 }
0x11b3   :  { %1793 = vpow2.f32 %v1585_v46 }
0x11bb   :  { %v1792_v45 = vpop.eup %1791 }
0x11bc   :  { %661 = vrot.lane.b32.xlu0 %v1792_v45, %s2006_s2 }
0x11bd   :  { %v1794_v47 = vpop.eup %1793 }
0x11be   :  { %v652_v48 = vadd.f32 1.0, %v1794_v47 }
0x11c0   :  { %1795 = vrcp.f32 %v652_v48 }
0x11ca   :  { %v1796_v49 = vpop.eup %1795 }
0x11cb   :  { %v659_v53 = vmul.f32 %v1796_v49, %v657_v52 }
0x122e   :  { %v662_v50 = vpop.permute.xlu0 %661 }
0x122f   :  { %v664_v51 = vmul.f32 %v1796_v49, %v662_v50 }
0x1231   :  { %666 = vrot.lane.b32.xlu1 %v664_v51, %s2007_s21 }
0x12a3   :  { %v667_v54 = vpop.permute.xlu1 %666 }
0x12a4   :  { %v669_v55 = vadd.f32 %v667_v54, %v659_v53 }
0x12a6   :  { %1797 = vtanh.f32 %v669_v55  ;;  %v736_v18 = vrot.slane %v669_v55, 7  ;;  %v2223_v55 = vrot.slane %v2100_v11, 1 }
0x12b0   :  { %v1798_v56 = vpop.eup %1797 }
0x12b1   :  { %672 = vrot.lane.b32.xlu0 %v1798_v56, %s2006_s2 }
0x1323   :  { %v673_v57 = vpop.permute.xlu0 %672 }
0x1324   :  { %v675_v58 = vmul.f32 %v1796_v49, %v673_v57 }
0x1326   :  { %v676_v59 = vpack.c.bf16 %v675_v58, %v675_v58 }
0x1328   :  { %v678_v60 = vrot.slane %v676_v59, 3 }
0x132a   :  { %679 = vrot.lane.b32.xlu1 %v678_v60, %s2007_s21 }
0x139c   :  { %v680_v61 = vpop.permute.xlu1 %679 }
0x139d   :  { %1713 = vmatmul.mubr.msk.bf16.vlgmr.msra.gmra.mrb[16].mxu0 %vm129_vm3, %v680_v61 }
0x139e   :  { %900 = vmatprep.mubr.bf16.mxu0 %v2005_v7 }
0x1470   :  { %v718_v62 = vpop.f32.mrb[16].mxu0 }
0x1471   :  { %v725_v63 = vrot.slane %v718_v62, 1  ;;  %v1714_v1 = vpop.f32.mrb[17].mxu0 }
0x1472   :  { %v721_v2 = vpop.f32.mrb[18].mxu0  ;;  %v923_v1 = vrot.slane %v2206_v30, 1 }
0x1473   :  { %v727_v4 = vadd.f32 %v725_v63, %v2103_v15  ;;  %v1715_v5 = vpop.f32.mrb[19].mxu0  ;;  %v2180_v15 = vld [vmem:[#allocation5 + $0x34] ss:$8 sps:$4 sm:$0xff]  }
0x1474   :  { %791 = vmatprep.subr.bf16.mxu1 %v2180_v15  ;;  %868 = vmatprep.subr.bf16.mxu0 %v2180_v15 }
0x1475   :  { %1799 = vtanh.f32 %v727_v4  ;;  %v1587_v10 = vmul.f32 -1.442695, %v727_v4  ;;  %792 = vmatpush1.bf16.msra.mxu1 %v2182_v22  ;;  %869 = vmatpush1.bf16.msra.mxu0 %v2182_v22 }
0x1476   :  { %793 = vmatprep.subr.bf16.mxu1 %v2184_v23  ;;  %870 = vmatprep.subr.bf16.mxu0 %v2184_v23 }
0x1477   :  { %1801 = vpow2.f32 %v1587_v10 }
0x1479   :  { %794 = vmatpush1.bf16.msra.mxu1 %v2189_v24  ;;  %871 = vmatpush1.bf16.msra.mxu0 %v2189_v24 }
0x147a   :  { %962 = vmatprep.subr.bf16.mxu1 %v2180_v15  ;;  %1051 = vmatprep.subr.bf16.mxu0 %v2180_v15 }
0x147f   :  { %v1800_v9 = vpop.eup %1799 }
0x1480   :  { %740 = vrot.lane.b32.xlu0 %v1800_v9, %s2006_s2  ;;  %v928_v9 = vrot.slane %v2209_v32, 1 }
0x1481   :  { %v1802_v12 = vpop.eup %1801 }
0x1482   :  { %v731_v13 = vadd.f32 1.0, %v1802_v12 }
0x1484   :  { %1803 = vrcp.f32 %v731_v13 }
0x148e   :  { %v1804_v14 = vpop.eup %1803 }
0x148f   :  { %v738_v19 = vmul.f32 %v1804_v14, %v736_v18 }
0x14f2   :  { %v741_v16 = vpop.permute.xlu0 %740 }
0x14f3   :  { %v743_v17 = vmul.f32 %v1804_v14, %v741_v16 }
0x14f5   :  { %745 = vrot.lane.b32.xlu1 %v743_v17, %s2007_s21 }
0x1567   :  { %v746_v20 = vpop.permute.xlu1 %745 }
0x1568   :  { %v748_v21 = vadd.f32 %v746_v20, %v738_v19 }
0x156a   :  { %1805 = vtanh.f32 %v748_v21  ;;  %v842_v46 = vrot.slane %v748_v21, 7 }
0x1574   :  { %v1806_v3 = vpop.eup %1805 }
0x1575   :  { %751 = vrot.lane.b32.xlu0 %v1806_v3, %s2006_s2 }
0x15e7   :  { %v752_v25 = vpop.permute.xlu0 %751 }
0x15e8   :  { %v754_v26 = vmul.f32 %v1804_v14, %v752_v25 }
0x15ea   :  { %v755_v27 = vpack.c.bf16 %v754_v26, %v754_v26 }
0x15ec   :  { %v763_v28 = vshrl.u32 %v755_v27, 16 }
0x15ee   :  { %v765_v6 = vrot.slane %v763_v28, 3 }
0x15f0   :  { %766 = vrot.lane.b32.xlu1 %v765_v6, %s2007_s21 }
0x1662   :  { %v767_v29 = vpop.permute.xlu1 %766 }
0x1663   :  { %1592 = vmatmul.mubr.msk.bf16.vlgmr.msra.gmra.mrb[16].mxu1 %vm129_vm3, %v767_v29 }
0x1664   :  { %963 = vmatpush1.bf16.msra.mxu1 %v2182_v22  ;;  %994 = vmatprep.mubr.bf16.mxu1 %v2005_v7 }
0x1665   :  { %964 = vmatprep.subr.bf16.mxu1 %v2184_v23 }
0x1668   :  { %965 = vmatpush1.bf16.msra.mxu1 %v2189_v24 }
0x1669   :  { %1140 = vmatprep.subr.bf16.mxu1 %v2180_v15 }
0x1736   :  { %v825_v33 = vpop.f32.mrb[16].mxu1 }
0x1737   :  { %v832_v34 = vadd.f32 %v831_v31, %v825_v33  ;;  %v827_v35 = vpop.f32.mrb[17].mxu1 }
0x1738   :  { %v828_v36 = vpop.f32.mrb[18].mxu1 }
0x1739   :  { %v833_v37 = vadd.f32 %v832_v34, %v2209_v32  ;;  %v829_v38 = vpop.f32.mrb[19].mxu1 }
0x173b   :  { %1807 = vtanh.f32 %v833_v37  ;;  %v1593_v40 = vmul.f32 -1.442695, %v833_v37 }
0x173d   :  { %1809 = vpow2.f32 %v1593_v40  ;;  %v1013_v40 = vrot.slane %v2206_v30, 2 }
0x1745   :  { %v1808_v39 = vpop.eup %1807 }
0x1746   :  { %846 = vrot.lane.b32.xlu0 %v1808_v39, %s2006_s2  ;;  %v2240_v39 = vand.u32 127, %v61_v8 }
0x1747   :  { %v1810_v41 = vpop.eup %1809 }
0x1748   :  { %v837_v42 = vadd.f32 1.0, %v1810_v41  ;;  %vm920_vm4 = vcmp.eq.s32.totalorder %v2240_v39, 0  ;;  %vm1011_vm5 = vcmp.eq.s32.totalorder %v2240_v39, 1  ;;  %vm1100_vm6 = vcmp.eq.s32.totalorder %v2240_v39, 2 }
0x1749   :  { %vm1189_vm7 = vcmp.eq.s32.totalorder %v2240_v39, 3  ;;  %vm1278_vm8 = vcmp.eq.s32.totalorder %v2240_v39, 4  ;;  %vm1367_vm9 = vcmp.eq.s32.totalorder %v2240_v39, 5  ;;  %vm1456_vm10 = vcmp.eq.s32.totalorder %v2240_v39, 6 }
0x174a   :  { %1811 = vrcp.f32 %v837_v42  ;;  %vm1543_vm11 = vcmp.eq.s32.totalorder %v2240_v39, 7 }
0x1754   :  { %v1812_v43 = vpop.eup %1811 }
0x1755   :  { %v844_v47 = vmul.f32 %v1812_v43, %v842_v46  ;;  %v1017_v46 = vrot.slane %v2209_v32, 2 }
0x17b8   :  { %v847_v44 = vpop.permute.xlu0 %846 }
0x17b9   :  { %v849_v45 = vmul.f32 %v1812_v43, %v847_v44 }
0x17bb   :  { %851 = vrot.lane.b32.xlu1 %v849_v45, %s2007_s21 }
0x182d   :  { %v852_v48 = vpop.permute.xlu1 %851 }
0x182e   :  { %v854_v49 = vadd.f32 %v852_v48, %v844_v47 }
0x1830   :  { %1813 = vtanh.f32 %v854_v49 }
0x183a   :  { %v1814_v50 = vpop.eup %1813 }
0x183b   :  { %857 = vrot.lane.b32.xlu0 %v1814_v50, %s2006_s2 }
0x18ad   :  { %v858_v51 = vpop.permute.xlu0 %857 }
0x18ae   :  { %v860_v52 = vmul.f32 %v1812_v43, %v858_v51 }
0x18b0   :  { %v861_v53 = vpack.c.bf16 %v860_v52, %v860_v52 }
0x18b2   :  { %863 = vrot.lane.b32.xlu1 %v861_v53, %s2007_s21 }
0x1924   :  { %v864_v54 = vpop.permute.xlu1 %863 }
0x1925   :  { %1594 = vmatmul.mubr.msk.bf16.vlgmr.msra.gmra.mrb[20].mxu0 %vm129_vm3, %v864_v54 }
0x1926   :  { %1052 = vmatpush1.bf16.msra.mxu0 %v2182_v22  ;;  %1083 = vmatprep.mubr.bf16.mxu0 %v2005_v7 }
0x1927   :  { %1053 = vmatprep.subr.bf16.mxu0 %v2184_v23 }
0x192a   :  { %1054 = vmatpush1.bf16.msra.mxu0 %v2189_v24 }
0x192b   :  { %1229 = vmatprep.subr.bf16.mxu0 %v2180_v15 }
0x19f8   :  { %v902_v56 = vpop.f32.mrb[20].mxu0 }
0x19f9   :  { %v904_v57 = vpop.f32.mrb[21].mxu0 }
0x19fa   :  { %v912_v58 = vadd.f32 %v2223_v55, %v904_v57  ;;  %v906_v59 = vpop.f32.mrb[22].mxu0 }
0x19fb   :  { %v907_v60 = vpop.f32.mrb[23].mxu0 }
0x19fc   :  { %v1595_v61 = vmul.f32 -1.442695, %v912_v58 }
0x19fe   :  { %1815 = vpow2.f32 %v1595_v61 }
0x1a08   :  { %v1816_v62 = vpop.eup %1815 }
0x1a09   :  { %v916_v63 = vadd.f32 1.0, %v1816_v62 }
0x1a0b   :  { %1817 = vrcp.f32 %v916_v63 }
0x1a15   :  { %v1818_v2 = vpop.eup %1817 }
0x1a16   :  { %v919_v4 = vmul.f32 2.0, %v1818_v2 }
0x1a18   :  { %v925_v5 = vmul.f32 %v923_v1, %v919_v4  ;;  %v921_v43 = vsel %vm920_vm4, %v919_v4, 0.0 }
0x1a1a   :  { %v926_v11 = vadd.f32 %v925_v5, %v902_v56 }
0x1a1c   :  { %v930_v10 = vadd.f32 %v928_v9, %v926_v11 }
0x1a1e   :  { %1819 = vtanh.f32 %v930_v10  ;;  %v1596_v13 = vmul.f32 -1.442695, %v930_v10 }
0x1a20   :  { %1821 = vpow2.f32 %v1596_v13  ;;  %v1102_v13 = vrot.slane %v2206_v30, 3 }
0x1a28   :  { %v1820_v12 = vpop.eup %1819 }
0x1a29   :  { %940 = vrot.lane.b32.xlu0 %v1820_v12, %s2006_s2 }
0x1a2a   :  { %v1822_v14 = vpop.eup %1821 }
0x1a2b   :  { %v934_v16 = vadd.f32 1.0, %v1822_v14 }
0x1a2d   :  { %1823 = vrcp.f32 %v934_v16 }
0x1a37   :  { %v1824_v17 = vpop.eup %1823 }
0x1a38   :  { %v938_v20 = vmul.f32 %v1824_v17, %v854_v49 }
0x1a9b   :  { %v941_v18 = vpop.permute.xlu0 %940 }
0x1a9c   :  { %v943_v19 = vmul.f32 %v1824_v17, %v941_v18 }
0x1a9e   :  { %945 = vrot.lane.b32.xlu1 %v943_v19, %s2007_s21  ;;  %v1106_v19 = vrot.slane %v2209_v32, 3 }
0x1b10   :  { %v946_v21 = vpop.permute.xlu1 %945 }
0x1b11   :  { %v948_v3 = vadd.f32 %v946_v21, %v938_v20 }
0x1b13   :  { %1825 = vtanh.f32 %v948_v3 }
0x1b1d   :  { %v1826_v25 = vpop.eup %1825 }
0x1b1e   :  { %951 = vrot.lane.b32.xlu0 %v1826_v25, %s2006_s2 }
0x1b90   :  { %v952_v26 = vpop.permute.xlu0 %951 }
0x1b91   :  { %v954_v27 = vmul.f32 %v1824_v17, %v952_v26 }
0x1b93   :  { %v955_v28 = vpack.c.bf16 %v954_v27, %v954_v27 }
0x1b95   :  { %957 = vrot.lane.b32.xlu1 %v955_v28, %s2007_s21 }
0x1c07   :  { %v958_v6 = vpop.permute.xlu1 %957 }
0x1c08   :  { %1597 = vmatmul.mubr.msk.bf16.vlgmr.msra.gmra.mrb[20].mxu1 %vm129_vm3, %v958_v6 }
0x1c09   :  { %1141 = vmatpush1.bf16.msra.mxu1 %v2182_v22  ;;  %1172 = vmatprep.mubr.bf16.mxu1 %v2005_v7 }
0x1c0a   :  { %1142 = vmatprep.subr.bf16.mxu1 %v2184_v23 }
0x1c0d   :  { %1143 = vmatpush1.bf16.msra.mxu1 %v2189_v24 }
0x1c0e   :  { %1318 = vmatprep.subr.bf16.mxu1 %v2180_v15 }
0x1cdb   :  { %v996_v29 = vpop.f32.mrb[20].mxu1 }
0x1cdc   :  { %v998_v31 = vpop.f32.mrb[21].mxu1 }
0x1cdd   :  { %v1003_v33 = vadd.f32 %v998_v31, %v2223_v55  ;;  %v1000_v34 = vpop.f32.mrb[22].mxu1 }
0x1cde   :  { %v1001_v35 = vpop.f32.mrb[23].mxu1 }
0x1cdf   :  { %v1598_v36 = vmul.f32 -1.442695, %v1003_v33 }
0x1ce1   :  { %1827 = vpow2.f32 %v1598_v36 }
0x1ceb   :  { %v1828_v37 = vpop.eup %1827 }
0x1cec   :  { %v1007_v38 = vadd.f32 1.0, %v1828_v37 }
0x1cee   :  { %1829 = vrcp.f32 %v1007_v38 }
0x1cf8   :  { %v1830_v41 = vpop.eup %1829 }
0x1cf9   :  { %v1010_v42 = vmul.f32 2.0, %v1830_v41 }
0x1cfb   :  { %v1012_v44 = vsel %vm1011_vm5, %v1010_v42, %v921_v43  ;;  %v1015_v45 = vmul.f32 %v1013_v40, %v1010_v42 }
0x1cfd   :  { %v1016_v47 = vadd.f32 %v1015_v45, %v996_v29 }
0x1cff   :  { %v1019_v48 = vadd.f32 %v1017_v46, %v1016_v47 }
0x1d01   :  { %1831 = vtanh.f32 %v1019_v48  ;;  %v1599_v8 = vmul.f32 -1.442695, %v1019_v48 }
0x1d03   :  { %1833 = vpow2.f32 %v1599_v8 }
0x1d0b   :  { %v1832_v49 = vpop.eup %1831 }
0x1d0c   :  { %1029 = vrot.lane.b32.xlu0 %v1832_v49, %s2006_s2  ;;  %v1191_v49 = vrot.slane %v2206_v30, 4 }
0x1d0d   :  { %v1834_v50 = vpop.eup %1833 }
0x1d0e   :  { %v1023_v51 = vadd.f32 1.0, %v1834_v50 }
0x1d10   :  { %1835 = vrcp.f32 %v1023_v51 }
0x1d1a   :  { %v1836_v52 = vpop.eup %1835 }
0x1d1b   :  { %v1027_v56 = vmul.f32 %v1836_v52, %v948_v3 }
0x1d7e   :  { %v1030_v53 = vpop.permute.xlu0 %1029 }
0x1d7f   :  { %v1032_v54 = vmul.f32 %v1836_v52, %v1030_v53  ;;  %v1195_v53 = vrot.slane %v2209_v32, 4 }
0x1d81   :  { %1034 = vrot.lane.b32.xlu1 %v1032_v54, %s2007_s21 }
0x1df3   :  { %v1035_v57 = vpop.permute.xlu1 %1034 }
0x1df4   :  { %v1037_v58 = vadd.f32 %v1035_v57, %v1027_v56 }
0x1df6   :  { %1837 = vtanh.f32 %v1037_v58 }
0x1e00   :  { %v1838_v59 = vpop.eup %1837 }
0x1e01   :  { %1040 = vrot.lane.b32.xlu0 %v1838_v59, %s2006_s2 }
0x1e73   :  { %v1041_v60 = vpop.permute.xlu0 %1040 }
0x1e74   :  { %v1043_v61 = vmul.f32 %v1836_v52, %v1041_v60 }
0x1e76   :  { %v1044_v62 = vpack.c.bf16 %v1043_v61, %v1043_v61 }
0x1e78   :  { %1046 = vrot.lane.b32.xlu1 %v1044_v62, %s2007_s21 }
0x1eea   :  { %v1047_v63 = vpop.permute.xlu1 %1046 }
0x1eeb   :  { %1600 = vmatmul.mubr.msk.bf16.vlgmr.msra.gmra.mrb[24].mxu0 %vm129_vm3, %v1047_v63 }
0x1eec   :  { %1230 = vmatpush1.bf16.msra.mxu0 %v2182_v22  ;;  %1261 = vmatprep.mubr.bf16.mxu0 %v2005_v7 }
0x1eed   :  { %1231 = vmatprep.subr.bf16.mxu0 %v2184_v23 }
0x1ef0   :  { %1232 = vmatpush1.bf16.msra.mxu0 %v2189_v24 }
0x1ef1   :  { %1407 = vmatprep.subr.bf16.mxu0 %v2180_v15 }
0x1fbe   :  { %v1085_v1 = vpop.f32.mrb[24].mxu0 }
0x1fbf   :  { %v1087_v2 = vpop.f32.mrb[25].mxu0 }
0x1fc0   :  { %v1092_v4 = vadd.f32 %v1087_v2, %v2223_v55  ;;  %v1089_v5 = vpop.f32.mrb[26].mxu0 }
0x1fc1   :  { %v1090_v9 = vpop.f32.mrb[27].mxu0 }
0x1fc2   :  { %v1601_v11 = vmul.f32 -1.442695, %v1092_v4 }
0x1fc4   :  { %1839 = vpow2.f32 %v1601_v11 }
0x1fce   :  { %v1840_v10 = vpop.eup %1839 }
0x1fcf   :  { %v1096_v12 = vadd.f32 1.0, %v1840_v10 }
0x1fd1   :  { %1841 = vrcp.f32 %v1096_v12 }
0x1fdb   :  { %v1842_v14 = vpop.eup %1841 }
0x1fdc   :  { %v1099_v16 = vmul.f32 2.0, %v1842_v14 }
0x1fde   :  { %v1101_v17 = vsel %vm1100_vm6, %v1099_v16, %v1012_v44  ;;  %v1104_v18 = vmul.f32 %v1102_v13, %v1099_v16 }
0x1fe0   :  { %v1105_v20 = vadd.f32 %v1104_v18, %v1085_v1 }
0x1fe2   :  { %v1108_v21 = vadd.f32 %v1106_v19, %v1105_v20 }
0x1fe4   :  { %1843 = vtanh.f32 %v1108_v21  ;;  %v1602_v25 = vmul.f32 -1.442695, %v1108_v21 }
0x1fe6   :  { %1845 = vpow2.f32 %v1602_v25 }
0x1fee   :  { %v1844_v3 = vpop.eup %1843 }
0x1fef   :  { %1118 = vrot.lane.b32.xlu0 %v1844_v3, %s2006_s2  ;;  %v1280_v3 = vrot.slane %v2206_v30, 5 }
0x1ff0   :  { %v1846_v26 = vpop.eup %1845 }
0x1ff1   :  { %v1112_v27 = vadd.f32 1.0, %v1846_v26 }
0x1ff3   :  { %1847 = vrcp.f32 %v1112_v27 }
0x1ffd   :  { %v1848_v28 = vpop.eup %1847 }
0x1ffe   :  { %v1116_v31 = vmul.f32 %v1848_v28, %v1037_v58 }
0x2061   :  { %v1119_v6 = vpop.permute.xlu0 %1118 }
0x2062   :  { %v1121_v29 = vmul.f32 %v1848_v28, %v1119_v6 }
0x2064   :  { %1123 = vrot.lane.b32.xlu1 %v1121_v29, %s2007_s21 }
0x20d6   :  { %v1124_v33 = vpop.permute.xlu1 %1123 }
0x20d7   :  { %v1126_v34 = vadd.f32 %v1124_v33, %v1116_v31 }
0x20d9   :  { %1849 = vtanh.f32 %v1126_v34 }
0x20e3   :  { %v1850_v35 = vpop.eup %1849 }
0x20e4   :  { %1129 = vrot.lane.b32.xlu0 %v1850_v35, %s2006_s2 }
0x2156   :  { %v1130_v36 = vpop.permute.xlu0 %1129 }
0x2157   :  { %v1132_v37 = vmul.f32 %v1848_v28, %v1130_v36 }
0x2159   :  { %v1133_v38 = vpack.c.bf16 %v1132_v37, %v1132_v37 }
0x215b   :  { %1135 = vrot.lane.b32.xlu1 %v1133_v38, %s2007_s21 }
0x21cd   :  { %v1136_v40 = vpop.permute.xlu1 %1135 }
0x21ce   :  { %1603 = vmatmul.mubr.msk.bf16.vlgmr.msra.gmra.mrb[24].mxu1 %vm129_vm3, %v1136_v40 }
0x21cf   :  { %1319 = vmatpush1.bf16.msra.mxu1 %v2182_v22  ;;  %1350 = vmatprep.mubr.bf16.mxu1 %v2005_v7 }
0x21d0   :  { %1320 = vmatprep.subr.bf16.mxu1 %v2184_v23 }
0x21d3   :  { %1321 = vmatpush1.bf16.msra.mxu1 %v2189_v24 }
0x21d4   :  { %1716 = vmatprep.subr.bf16.mxu1 %v2003_v0 }
0x22a1   :  { %v1174_v41 = vpop.f32.mrb[24].mxu1 }
0x22a2   :  { %v1176_v42 = vpop.f32.mrb[25].mxu1 }
0x22a3   :  { %v1181_v43 = vadd.f32 %v1176_v42, %v2223_v55  ;;  %v1178_v44 = vpop.f32.mrb[26].mxu1 }
0x22a4   :  { %v1179_v45 = vpop.f32.mrb[27].mxu1 }
0x22a5   :  { %v1604_v46 = vmul.f32 -1.442695, %v1181_v43 }
0x22a7   :  { %1851 = vpow2.f32 %v1604_v46 }
0x22b1   :  { %v1852_v47 = vpop.eup %1851 }
0x22b2   :  { %v1185_v48 = vadd.f32 1.0, %v1852_v47 }
0x22b4   :  { %1853 = vrcp.f32 %v1185_v48 }
0x22be   :  { %v1854_v8 = vpop.eup %1853 }
0x22bf   :  { %v1188_v50 = vmul.f32 2.0, %v1854_v8 }
0x22c1   :  { %v1190_v51 = vsel %vm1189_vm7, %v1188_v50, %v1101_v17  ;;  %v1193_v52 = vmul.f32 %v1191_v49, %v1188_v50 }
0x22c3   :  { %v1194_v54 = vadd.f32 %v1193_v52, %v1174_v41 }
0x22c5   :  { %v1197_v56 = vadd.f32 %v1195_v53, %v1194_v54 }
0x22c7   :  { %1855 = vtanh.f32 %v1197_v56  ;;  %v1605_v58 = vmul.f32 -1.442695, %v1197_v56 }
0x22c9   :  { %1857 = vpow2.f32 %v1605_v58 }
0x22d1   :  { %v1856_v57 = vpop.eup %1855 }
0x22d2   :  { %1207 = vrot.lane.b32.xlu0 %v1856_v57, %s2006_s2 }
0x22d3   :  { %v1858_v59 = vpop.eup %1857 }
0x22d4   :  { %v1201_v60 = vadd.f32 1.0, %v1858_v59 }
0x22d6   :  { %1859 = vrcp.f32 %v1201_v60 }
0x22e0   :  { %v1860_v61 = vpop.eup %1859 }
0x22e1   :  { %v1205_v1 = vmul.f32 %v1860_v61, %v1126_v34 }
0x2344   :  { %v1208_v62 = vpop.permute.xlu0 %1207 }
0x2345   :  { %v1210_v63 = vmul.f32 %v1860_v61, %v1208_v62 }
0x2347   :  { %1212 = vrot.lane.b32.xlu1 %v1210_v63, %s2007_s21 }
0x23b9   :  { %v1213_v2 = vpop.permute.xlu1 %1212 }
0x23ba   :  { %v1215_v4 = vadd.f32 %v1213_v2, %v1205_v1 }
0x23bc   :  { %1861 = vtanh.f32 %v1215_v4 }
0x23c6   :  { %v1862_v5 = vpop.eup %1861 }
0x23c7   :  { %1218 = vrot.lane.b32.xlu0 %v1862_v5, %s2006_s2 }
0x2439   :  { %v1219_v9 = vpop.permute.xlu0 %1218 }
0x243a   :  { %v1221_v11 = vmul.f32 %v1860_v61, %v1219_v9 }
0x243c   :  { %v1222_v10 = vpack.c.bf16 %v1221_v11, %v1221_v11 }
0x243e   :  { %1224 = vrot.lane.b32.xlu1 %v1222_v10, %s2007_s21 }
0x24b0   :  { %v1225_v12 = vpop.permute.xlu1 %1224 }
0x24b1   :  { %1606 = vmatmul.mubr.msk.bf16.vlgmr.msra.gmra.mrb[28].mxu0 %vm129_vm3, %v1225_v12 }
0x24b2   :  { %1408 = vmatpush1.bf16.msra.mxu0 %v2182_v22  ;;  %1439 = vmatprep.mubr.bf16.mxu0 %v2005_v7 }
0x24b3   :  { %1409 = vmatprep.subr.bf16.mxu0 %v2184_v23 }
0x24b6   :  { %1410 = vmatpush1.bf16.msra.mxu0 %v2189_v24  ;;  %v1284_v24 = vrot.slane %v2209_v32, 5 }
0x2584   :  { %v1263_v13 = vpop.f32.mrb[28].mxu0 }
0x2585   :  { %v1265_v14 = vpop.f32.mrb[29].mxu0 }
0x2586   :  { %v1270_v16 = vadd.f32 %v1265_v14, %v2223_v55  ;;  %v1267_v17 = vpop.f32.mrb[30].mxu0 }
0x2587   :  { %v1268_v18 = vpop.f32.mrb[31].mxu0 }
0x2588   :  { %v1607_v19 = vmul.f32 -1.442695, %v1270_v16 }
0x258a   :  { %1863 = vpow2.f32 %v1607_v19 }
0x2594   :  { %v1864_v20 = vpop.eup %1863 }
0x2595   :  { %v1274_v21 = vadd.f32 1.0, %v1864_v20 }
0x2597   :  { %1865 = vrcp.f32 %v1274_v21 }
0x25a1   :  { %v1866_v22 = vpop.eup %1865 }
0x25a2   :  { %v1277_v7 = vmul.f32 2.0, %v1866_v22 }
0x25a4   :  { %v1279_v25 = vsel %vm1278_vm8, %v1277_v7, %v1190_v51  ;;  %v1282_v26 = vmul.f32 %v1280_v3, %v1277_v7  ;;  %v1458_v7 = vrot.slane %v2206_v30, 7 }
0x25a6   :  { %v1283_v27 = vadd.f32 %v1282_v26, %v1263_v13 }
0x25a8   :  { %v1286_v28 = vadd.f32 %v1284_v24, %v1283_v27  ;;  %v1462_v27 = vrot.slane %v2209_v32, 7 }
0x25aa   :  { %1867 = vtanh.f32 %v1286_v28  ;;  %v1608_v29 = vmul.f32 -1.442695, %v1286_v28 }
0x25ac   :  { %1869 = vpow2.f32 %v1608_v29 }
0x25b4   :  { %v1868_v6 = vpop.eup %1867 }
0x25b5   :  { %1296 = vrot.lane.b32.xlu0 %v1868_v6, %s2006_s2 }
0x25b6   :  { %v1870_v31 = vpop.eup %1869 }
0x25b7   :  { %v1290_v33 = vadd.f32 1.0, %v1870_v31 }
0x25b9   :  { %1871 = vrcp.f32 %v1290_v33 }
0x25c3   :  { %v1872_v34 = vpop.eup %1871 }
0x25c4   :  { %v1294_v37 = vmul.f32 %v1872_v34, %v1215_v4 }
0x2627   :  { %v1297_v35 = vpop.permute.xlu0 %1296 }
0x2628   :  { %v1299_v36 = vmul.f32 %v1872_v34, %v1297_v35 }
0x262a   :  { %1301 = vrot.lane.b32.xlu1 %v1299_v36, %s2007_s21 }
0x269c   :  { %v1302_v38 = vpop.permute.xlu1 %1301 }
0x269d   :  { %v1304_v40 = vadd.f32 %v1302_v38, %v1294_v37 }
0x269f   :  { %1873 = vtanh.f32 %v1304_v40 }
0x26a9   :  { %v1874_v41 = vpop.eup %1873 }
0x26aa   :  { %1307 = vrot.lane.b32.xlu0 %v1874_v41, %s2006_s2 }
0x271c   :  { %v1308_v42 = vpop.permute.xlu0 %1307 }
0x271d   :  { %v1310_v43 = vmul.f32 %v1872_v34, %v1308_v42 }
0x271f   :  { %v1311_v44 = vpack.c.bf16 %v1310_v43, %v1310_v43 }
0x2721   :  { %1313 = vrot.lane.b32.xlu1 %v1311_v44, %s2007_s21 }
0x2793   :  { %v1314_v45 = vpop.permute.xlu1 %1313 }
0x2794   :  { %1609 = vmatmul.mubr.msk.bf16.vlgmr.msra.gmra.mrb[28].mxu1 %vm129_vm3, %v1314_v45 }
0x2795   :  { %1717 = vmatpush3.bf16.msra.mxu1 %v2180_v15  ;;  %1720 = vmatprep.mubr.msk.bf16.mxu1 %vm2004_vm0, %v2003_v0  ;;  %v1369_v15 = vrot.slane %v2206_v30, 6 }
0x2796   :  { %1718 = vmatprep.subr.bf16.mxu1 %v2003_v0 }
0x2799   :  { %1719 = vmatpush3.bf16.msra.mxu1 %v2184_v23  ;;  %v1373_v23 = vrot.slane %v2209_v32, 6 }
0x2867   :  { %v1352_v46 = vpop.f32.mrb[28].mxu1 }
0x2868   :  { %v1354_v47 = vpop.f32.mrb[29].mxu1 }
0x2869   :  { %v1359_v48 = vadd.f32 %v1354_v47, %v2223_v55  ;;  %v1356_v49 = vpop.f32.mrb[30].mxu1 }
0x286a   :  { %v1357_v8 = vpop.f32.mrb[31].mxu1 }
0x286b   :  { %v1610_v50 = vmul.f32 -1.442695, %v1359_v48 }
0x286d   :  { %1875 = vpow2.f32 %v1610_v50 }
0x2877   :  { %v1876_v51 = vpop.eup %1875 }
0x2878   :  { %v1363_v52 = vadd.f32 1.0, %v1876_v51 }
0x287a   :  { %1877 = vrcp.f32 %v1363_v52 }
0x2884   :  { %v1878_v53 = vpop.eup %1877 }
0x2885   :  { %v1366_v54 = vmul.f32 2.0, %v1878_v53 }
0x2887   :  { %v1368_v0 = vsel %vm1367_vm9, %v1366_v54, %v1279_v25  ;;  %v1371_v56 = vmul.f32 %v1369_v15, %v1366_v54 }
0x2889   :  { %v1372_v57 = vadd.f32 %v1371_v56, %v1352_v46  ;;  %v1903_v56 = vld [vmem:[#allocation7 + $0x10] sm:$0xff] }
0x288b   :  { %v1375_v58 = vadd.f32 %v1373_v23, %v1372_v57 }
0x288d   :  { %1879 = vtanh.f32 %v1375_v58  ;;  %v1611_v60 = vmul.f32 -1.442695, %v1375_v58 }
0x288f   :  { %1881 = vpow2.f32 %v1611_v60 }
0x2897   :  { %v1880_v59 = vpop.eup %1879 }
0x2898   :  { %1385 = vrot.lane.b32.xlu0 %v1880_v59, %s2006_s2 }
0x2899   :  { %v1882_v61 = vpop.eup %1881 }
0x289a   :  { %v1379_v62 = vadd.f32 1.0, %v1882_v61 }
0x289c   :  { %1883 = vrcp.f32 %v1379_v62 }
0x28a6   :  { %v1884_v63 = vpop.eup %1883 }
0x28a7   :  { %v1383_v4 = vmul.f32 %v1884_v63, %v1304_v40 }
0x290a   :  { %v1386_v1 = vpop.permute.xlu0 %1385 }
0x290b   :  { %v1388_v2 = vmul.f32 %v1884_v63, %v1386_v1 }
0x290d   :  { %1390 = vrot.lane.b32.xlu1 %v1388_v2, %s2007_s21 }
0x297f   :  { %v1391_v5 = vpop.permute.xlu1 %1390 }
0x2980   :  { %v1393_v9 = vadd.f32 %v1391_v5, %v1383_v4 }
0x2982   :  { %1885 = vtanh.f32 %v1393_v9 }
0x298c   :  { %v1886_v11 = vpop.eup %1885 }
0x298d   :  { %1396 = vrot.lane.b32.xlu0 %v1886_v11, %s2006_s2 }
0x29ff   :  { %v1397_v10 = vpop.permute.xlu0 %1396 }
0x2a00   :  { %v1399_v12 = vmul.f32 %v1884_v63, %v1397_v10 }
0x2a02   :  { %v1400_v13 = vpack.c.bf16 %v1399_v12, %v1399_v12 }
0x2a04   :  { %1402 = vrot.lane.b32.xlu1 %v1400_v13, %s2007_s21 }
0x2a76   :  { %v1403_v14 = vpop.permute.xlu1 %1402 }
0x2a77   :  { %1612 = vmatmul.mubr.msk.bf16.vlgmr.msra.gmra.mrb[32].mxu0 %vm129_vm3, %v1403_v14 }
0x2b4a   :  { %v1441_v16 = vpop.f32.mrb[32].mxu0 }
0x2b4b   :  { %v1443_v17 = vpop.f32.mrb[33].mxu0 }
0x2b4c   :  { %v1448_v18 = vadd.f32 %v1443_v17, %v2223_v55  ;;  %v1445_v19 = vpop.f32.mrb[34].mxu0 }
0x2b4d   :  { %v1446_v20 = vpop.f32.mrb[35].mxu0 }
0x2b4e   :  { %v1613_v21 = vmul.f32 -1.442695, %v1448_v18 }
0x2b50   :  { %1887 = vpow2.f32 %v1613_v21 }
0x2b5a   :  { %v1888_v3 = vpop.eup %1887 }
0x2b5b   :  { %v1452_v22 = vadd.f32 1.0, %v1888_v3 }
0x2b5d   :  { %1889 = vrcp.f32 %v1452_v22 }
0x2b67   :  { %v1890_v25 = vpop.eup %1889 }
0x2b68   :  { %v1455_v26 = vmul.f32 2.0, %v1890_v25 }
0x2b6a   :  { %v1460_v24 = vmul.f32 %v1458_v7, %v1455_v26  ;;  %v1457_v28 = vsel %vm1456_vm10, %v1455_v26, %v1368_v0 }
0x2b6c   :  { %v1461_v6 = vadd.f32 %v1460_v24, %v1441_v16 }
0x2b6e   :  { %v1464_v29 = vadd.f32 %v1462_v27, %v1461_v6 }
0x2b70   :  { %1891 = vtanh.f32 %v1464_v29  ;;  %v1614_v33 = vmul.f32 -1.442695, %v1464_v29 }
0x2b72   :  { %1893 = vpow2.f32 %v1614_v33 }
0x2b7a   :  { %v1892_v31 = vpop.eup %1891 }
0x2b7b   :  { %1474 = vrot.lane.b32.xlu0 %v1892_v31, %s2006_s2 }
0x2b7c   :  { %v1894_v34 = vpop.eup %1893 }
0x2b7d   :  { %v1468_v35 = vadd.f32 1.0, %v1894_v34 }
0x2b7f   :  { %1895 = vrcp.f32 %v1468_v35 }
0x2b89   :  { %v1896_v30 = vpop.eup %1895 }
0x2b8a   :  { %v1472_v38 = vmul.f32 %v1896_v30, %v1393_v9 }
0x2bed   :  { %v1475_v36 = vpop.permute.xlu0 %1474 }
0x2bee   :  { %v1477_v37 = vmul.f32 %v1896_v30, %v1475_v36 }
0x2bf0   :  { %1479 = vrot.lane.b32.xlu1 %v1477_v37, %s2007_s21 }
0x2c62   :  { %v1480_v40 = vpop.permute.xlu1 %1479 }
0x2c63   :  { %v1482_v32 = vadd.f32 %v1480_v40, %v1472_v38 }
0x2c65   :  { %1897 = vtanh.f32 %v1482_v32 }
0x2c6f   :  { %v1898_v41 = vpop.eup %1897 }
0x2c70   :  { %1485 = vrot.lane.b32.xlu0 %v1898_v41, %s2006_s2 }
0x2ce2   :  { %v1486_v42 = vpop.permute.xlu0 %1485 }
0x2ce3   :  { %v1488_v43 = vmul.f32 %v1896_v30, %v1486_v42 }
0x2ce5   :  { %v1489_v44 = vpack.c.bf16 %v1488_v43, %v1488_v43 }
0x2ce7   :  { %1491 = vrot.lane.b32.xlu1 %v1489_v44, %s2007_s21 }
0x2d59   :  { %v1492_v45 = vpop.permute.xlu1 %1491 }
0x2d5a   :  { %1721 = vmatmul.mubr.msk.bf16.vlgmr.msra.gmra.mrb[32].mxu1 %vm129_vm3, %v1492_v45 }
0x2e2d   :  { %v1530_v46 = vpop.f32.mrb[32].mxu1 }
0x2e2e   :  { %v1531_v47 = vadd.f32 %v1530_v46, %v2223_v55  ;;  %v1722_v48 = vpop.f32.mrb[33].mxu1 }
0x2e2f   :  { %v1533_v49 = vpop.f32.mrb[34].mxu1 }
0x2e30   :  { %v1616_v8 = vmul.f32 -1.442695, %v1531_v47  ;;  %v1723_v50 = vpop.f32.mrb[35].mxu1 }
0x2e32   :  { %1899 = vpow2.f32 %v1616_v8 }
0x2e3c   :  { %v1900_v51 = vpop.eup %1899 }
0x2e3d   :  { %v1539_v52 = vadd.f32 1.0, %v1900_v51 }
0x2e3f   :  { %1901 = vrcp.f32 %v1539_v52 }
0x2e49   :  { %v1902_v15 = vpop.eup %1901 }
0x2e4a   :  { %v1542_v53 = vmul.f32 2.0, %v1902_v15 }
0x2e4c   :  { %v1544_v54 = vsel %vm1543_vm11, %v1542_v53, %v1457_v28 }
0x2e4d   :  { %v1546_v0 = vrot.slane %v1544_v54, 5 }
0x2e4f   :  { %v1548_v23 = vmul.f32 %v1903_v56, %v1546_v0 }
0x2e51   :  { %v1550_v57 = vrot.slane %v1548_v23, 1 }
0x2e53   :  { %v1552_v55 = vadd.f32 %v1903_v56, %v1550_v57 }
0x2e55   :  { %1553 = vst [vmem:[#allocation8 - $0x2] sm:$0x4] %v1552_v55 }
0x2e56   :  { %1981 = shalt.err (!%p1978_p0)
}
0x2e57   :  { %s1982_s28 = scalar_lea.hbm %s2332_s3, 16 }
0x2e58   :  { %p1983_p1 = scmp.ne.s32.totalorder %s2332_s3, %s1982_s28  ;;  %p1986_p2 = scmp.lt.u32.totalorder %s1982_s28, %s2332_s3 }
0x2e5a   :  { %p1988_p3 = pnand %p1986_p2, %p1983_p1 }
0x2e5c   :  { %1991 = shalt.err (!%p1988_p3)
}
0x2e5d   :  { %1563 = dma.vmem_to_hbm [thread:$0]  %s1561_s23, 16, %s2332_s3, [#allocation4]  }
0x2e5e   :  { %1996 = dma.done.wait [#allocation4], 16  }
0x2e5f   :  { %1997 = vsyncadd [#allocation4], 4294967280 }
0x2e60   :  { %1567 = vsyncpa [#allocation3], 1 }
0x2e61   :  { %1568 = vsyncpa [#allocation6], 1 }
0x2e62   :  { %1569 = vsyncpa [#allocation4], 1 }

</bundles_post_ra>
